<compile_context>
chip_gen: v5e
topology: v5e:2x2
jax: 0.10.0
libtpu: 0.0.40
codegen_flags: <defaults>
</compile_context>

<pallas_src>
import functools
import numpy as np
import jax
import jax.numpy as jnp
from jax import lax
from jax.experimental import pallas as pl
from jax.experimental.pallas import tpu as pltpu

BN_EPS = 1e-5


# --------------------------------------------------------------------------- #
# Fused kernel: whole Mnet forward for one block of B samples packed as (C, L).
# --------------------------------------------------------------------------- #
def _mnet_kernel(T, shifts, x_ref, w1_ref, b1_ref, w2_ref, b2_ref, tau_ref,
                 masks_ref, o_ref, col_ref):
    C = x_ref.shape[1]

    def conv3x3(act, w_ref, b_ref, t):
        # Build the im2col RHS (9*C, L): rows [tap*C, tap*C+C) hold the
        # activation shifted by (dy, dx); out-of-image (and cross-sample)
        # wrapped lanes are zeroed by masks folded into the window writes.
        for tap, s in enumerate(shifts):
            win = act if s == 0 else pltpu.roll(act, s, axis=1)   # lane rotate
            if tap != 4:                        # center tap needs no mask
                win = win * masks_ref[tap]      # (C, L) * (1, L)
            col_ref[pl.ds(tap * C, C), :] = win
        # One MXU matmul per conv: (C, 9C) @ (9C, L), f32 accumulate.
        out = jnp.dot(w_ref[t], col_ref[...],
                      preferred_element_type=jnp.float32,
                      precision=lax.Precision.HIGHEST)
        return out + b_ref[t]                   # folded BN shift + conv bias

    M = x_ref[0]                                # (C, L), stays VMEM/vreg resident
    for t in range(T):                          # T is tiny -> keep unrolled
        h = jnp.maximum(conv3x3(M, w1_ref, b1_ref, t), 0.0)      # relu(BN1(conv1(M)))
        M = jnp.maximum(M + conv3x3(h, w2_ref, b2_ref, t), 0.0)  # relu(M + BN2(conv2(.)))
    o_ref[0] = jnp.maximum(M - tau_ref[...], 0.0)                # relu(M - tau)


# --------------------------------------------------------------------------- #
# Host-side parameter folding (eval-mode BN + conv bias -> packed weight/bias)
# --------------------------------------------------------------------------- #
def _fold_and_stack(params):
    """Fold BN scale into conv weights and pack lane-dense per iteration.

    Returns w1, b1, w2, b2 with shapes (T, C, 9*C), (T, C, 1), ... where
    w[t, o, tap*C + i] multiplies input channel i at offset tap=(dy+1)*3+(dx+1).
    """
    def fold(w_oihw, b_conv, gamma, beta, mean, var):
        C = w_oihw.shape[0]
        scale = gamma * lax.rsqrt(var + BN_EPS)            # (C,)
        shift = beta - mean * scale                        # (C,)
        w_eff = w_oihw * scale[:, None, None, None]        # scale per out channel
        b_eff = scale * b_conv + shift                     # conv bias folded too
        # (O, I, KH, KW) -> (O, KH, KW, I) -> (O, 9*I); col = (ky*3+kx)*C + i
        w_packed = jnp.transpose(w_eff, (0, 2, 3, 1)).reshape(C, 9 * C)
        return w_packed, b_eff.reshape(C, 1)

    w1s, b1s, w2s, b2s = [], [], [], []
    for p in params:
        w1, b1 = fold(p["w1"], p["bc1"], p["g1"], p["be1"], p["m1"], p["v1"])
        w2, b2 = fold(p["w2"], p["bc2"], p["g2"], p["be2"], p["m2"], p["v2"])
        w1s.append(w1); b1s.append(b1); w2s.append(w2); b2s.append(b2)
    return jnp.stack(w1s), jnp.stack(b1s), jnp.stack(w2s), jnp.stack(b2s)


def _pick_block_batch(n):
    # Pack B samples per grid step into the lane dim to amortize the per-step
    # overhead, but keep >= 2 grid steps so v7x's two TensorCores both get work.
    for b in (8, 4, 2):
        if n % b == 0 and n // b >= 2:
            return b
    return 1


def _make_masks_and_shifts(H, W, B, HW):
    """Per-tap wrap masks (9, 1, B*HW) and lane-roll shifts for the 9 taps."""
    L = B * HW
    q = np.arange(L)
    h = (q % HW) // W
    w = q % W
    masks, shifts = [], []
    for dy in (-1, 0, 1):
        for dx in (-1, 0, 1):
            m = np.ones(L, np.float32)
            if dy == -1: m *= (h != 0)
            if dy == +1: m *= (h != H - 1)
            if dx == -1: m *= (w != 0)
            if dx == +1: m *= (w != W - 1)
            masks.append(m)
            shifts.append((-(dy * W + dx)) % L)   # window[q] = act[q + dy*W + dx]
    return jnp.asarray(np.stack(masks).reshape(9, 1, L)), tuple(shifts)


# --------------------------------------------------------------------------- #
# Public forward: NCHW in -> NCHW out (matches the PyTorch module)
# --------------------------------------------------------------------------- #
def mnet_forward(x_nchw, params, tau):
    N, C, H, W = x_nchw.shape
    HW = H * W
    T = len(params)
    B = _pick_block_batch(N)
    G = N // B
    L = B * HW

    # Pack B samples along the lane dim: (N, C, H, W) -> (G, C, B*HW).
    x = x_nchw.reshape(G, B, C, HW).transpose(0, 2, 1, 3).reshape(G, C, L)
    w1, b1, w2, b2 = _fold_and_stack(params)
    tau_c = tau.reshape(C, 1)
    masks, shifts = _make_masks_and_shifts(H, W, B, HW)

    flops = 2 * N * T * 2 * C * (9 * C) * HW
    bytes_accessed = 4 * (2 * N * C * HW + 2 * T * 9 * C * C + 2 * T * C
                          + C + 9 * L)
    kernel = functools.partial(_mnet_kernel, T, shifts)
    out = pl.pallas_call(
        kernel,
        out_shape=jax.ShapeDtypeStruct((G, C, L), jnp.float32),
        grid_spec=pltpu.PrefetchScalarGridSpec(
            num_scalar_prefetch=0,
            grid=(G,),
            in_specs=[
                pl.BlockSpec((1, C, L), lambda n: (n, 0, 0)),          # x block
                pl.BlockSpec((T, C, 9 * C), lambda n: (0, 0, 0)),      # w1 packed
                pl.BlockSpec((T, C, 1), lambda n: (0, 0, 0)),          # b1 folded
                pl.BlockSpec((T, C, 9 * C), lambda n: (0, 0, 0)),      # w2 packed
                pl.BlockSpec((T, C, 1), lambda n: (0, 0, 0)),          # b2 folded
                pl.BlockSpec((C, 1), lambda n: (0, 0)),                # tau
                pl.BlockSpec((9, 1, L), lambda n: (0, 0, 0)),          # wrap masks
            ],
            out_specs=pl.BlockSpec((1, C, L), lambda n: (n, 0, 0)),
            scratch_shapes=[pltpu.VMEM((9 * C, L), jnp.float32)],      # im2col RHS
        ),
        compiler_params=pltpu.CompilerParams(
            dimension_semantics=("parallel",)),
        input_output_aliases={0: 0},           # x is dead after the kernel
        cost_estimate=pl.CostEstimate(flops=flops, transcendentals=0,
                                      bytes_accessed=bytes_accessed),
    )(x, w1, b1, w2, b2, tau_c, masks)

    return out.reshape(G, C, B, HW).transpose(0, 2, 1, 3).reshape(N, C, H, W)


# --------------------------------------------------------------------------- #
# Deterministic synthetic parameters (torch-like layout: OIHW conv + BN stats)
# --------------------------------------------------------------------------- #
def init_params(key, C, T):
    params = []
    for _ in range(T):
        key, *ks = jax.random.split(key, 13)

        def bn(kg, kb, km, kv):
            gamma = 1.0 + 0.1 * jax.random.normal(kg, (C,), jnp.float32)
            beta = 0.1 * jax.random.normal(kb, (C,), jnp.float32)
            mean = 0.1 * jax.random.normal(km, (C,), jnp.float32)
            var = 1.0 + 0.1 * jax.random.uniform(kv, (C,), jnp.float32)
            return gamma, beta, mean, var

        w1 = 0.05 * jax.random.normal(ks[0], (C, C, 3, 3), jnp.float32)   # OIHW
        bc1 = 0.05 * jax.random.normal(ks[1], (C,), jnp.float32)
        g1, be1, m1, v1 = bn(ks[2], ks[3], ks[4], ks[5])
        w2 = 0.05 * jax.random.normal(ks[6], (C, C, 3, 3), jnp.float32)   # OIHW
        bc2 = 0.05 * jax.random.normal(ks[7], (C,), jnp.float32)
        g2, be2, m2, v2 = bn(ks[8], ks[9], ks[10], ks[11])
        params.append(dict(w1=w1, bc1=bc1, g1=g1, be1=be1, m1=m1, v1=v1,
                           w2=w2, bc2=bc2, g2=g2, be2=be2, m2=m2, v2=v2))
    # nn.Parameter tau: tau0 = 0.5 expanded to (1, C, 1, 1)
    tau = jnp.full((1, C, 1, 1), 0.5, jnp.float32)
    return params, tau


# --------------------------------------------------------------------------- #
# Pure-JAX reference (f32 / HIGHEST) for self-check
# --------------------------------------------------------------------------- #
def ref_forward(x_nchw, params, tau):
    dn = ("NCHW", "OIHW", "NCHW")

    def bn_eval(x, g, b, m, v):
        s = g * lax.rsqrt(v + BN_EPS)
        return x * s[None, :, None, None] + (b - m * s)[None, :, None, None]

    M = x_nchw
    for p in params:
        h = lax.conv_general_dilated(M, p["w1"], (1, 1), "SAME",
                                     dimension_numbers=dn,
                                     precision=lax.Precision.HIGHEST)
        h = h + p["bc1"][None, :, None, None]
        h = jnp.maximum(bn_eval(h, p["g1"], p["be1"], p["m1"], p["v1"]), 0.0)
        h = lax.conv_general_dilated(h, p["w2"], (1, 1), "SAME",
                                     dimension_numbers=dn,
                                     precision=lax.Precision.HIGHEST)
        h = h + p["bc2"][None, :, None, None]
        h = bn_eval(h, p["g2"], p["be2"], p["m2"], p["v2"])
        M = jnp.maximum(M + h, 0.0)
    return jnp.maximum(M - tau, 0.0)


# --------------------------------------------------------------------------- #
if __name__ == "__main__":
    # args.num_M = 4, args.num_rot = 2 -> channels = 8 ;  args.T = 2
    num_M, num_rot, T = 4, 2, 2
    C = num_M * num_rot
    N, H, W = 2, 16, 16

    key = jax.random.PRNGKey(0)
    kx, kp = jax.random.split(key)
    x = jax.random.normal(kx, (N, C, H, W), jnp.float32)   # NCHW, like PyTorch
    params, tau = init_params(kp, C, T)

    out = jax.block_until_ready(jax.jit(mnet_forward)(x, params, tau))
    ref = jax.block_until_ready(jax.jit(ref_forward)(x, params, tau))

    assert out.shape == (N, C, H, W) and out.dtype == jnp.float32
    # Kernel matmuls run at f32/HIGHEST like the reference; only BN-folding
    # rounding differs, so the tolerance is tight.
    np.testing.assert_allclose(np.asarray(out), np.asarray(ref),
                               rtol=5e-4, atol=5e-4)
    print("KERNEL_OK")
</pallas_src>

<mosaic_0001>
module attributes {stable_mosaic.version = 11 : i64} {
  func.func @_mnet_kernel(%arg0: i32, %arg1: memref<1x8x256xf32, #tpu.memory_space<vmem>>, %arg2: memref<2x8x72xf32, #tpu.memory_space<vmem>>, %arg3: memref<2x8x1xf32, #tpu.memory_space<vmem>>, %arg4: memref<2x8x72xf32, #tpu.memory_space<vmem>>, %arg5: memref<2x8x1xf32, #tpu.memory_space<vmem>>, %arg6: memref<8x1xf32, #tpu.memory_space<vmem>>, %arg7: memref<9x1x256xf32, #tpu.memory_space<vmem>>, %arg8: memref<1x8x256xf32, #tpu.memory_space<vmem>>, %arg9: memref<72x256xf32, #tpu.memory_space<vmem>>) attributes {dimension_semantics = [#tpu.dimension_semantics<parallel>], iteration_bounds = array<i64: 2>, scalar_prefetch = 0 : i64, scratch_operands = 1 : i64, tpu.core_type = #tpu.core_type<tc>, window_params = [{transform_indices = @transform_0, window_bounds = array<i64: 1, 8, 256>}, {pipeline_mode = #tpu.pipeline_mode<synchronous>, transform_indices = @transform_1, window_bounds = array<i64: 2, 8, 72>}, {pipeline_mode = #tpu.pipeline_mode<synchronous>, transform_indices = @transform_2, window_bounds = array<i64: 2, 8, 1>}, {pipeline_mode = #tpu.pipeline_mode<synchronous>, transform_indices = @transform_3, window_bounds = array<i64: 2, 8, 72>}, {pipeline_mode = #tpu.pipeline_mode<synchronous>, transform_indices = @transform_4, window_bounds = array<i64: 2, 8, 1>}, {pipeline_mode = #tpu.pipeline_mode<synchronous>, transform_indices = @transform_5, window_bounds = array<i64: 8, 1>}, {pipeline_mode = #tpu.pipeline_mode<synchronous>, transform_indices = @transform_6, window_bounds = array<i64: 9, 1, 256>}, {transform_indices = @transform_7, window_bounds = array<i64: 1, 8, 256>}]} {
    %c0 = arith.constant 0 : index
    %c0_0 = arith.constant 0 : index
    %c0_1 = arith.constant 0 : index
    %0 = vector.load %arg1[%c0, %c0_0, %c0_1] : memref<1x8x256xf32, #tpu.memory_space<vmem>>, vector<1x8x256xf32>
    %1 = vector.shape_cast %0 : vector<1x8x256xf32> to vector<8x256xf32>
    %c17_i32 = arith.constant 17 : i32
    %2 = tpu.dynamic_rotate %1 by %c17_i32 dim 1 : vector<8x256xf32>, i32 -> vector<8x256xf32>
    %c0_2 = arith.constant 0 : index
    %c0_3 = arith.constant 0 : index
    %c0_4 = arith.constant 0 : index
    %3 = vector.load %arg7[%c0_2, %c0_3, %c0_4] : memref<9x1x256xf32, #tpu.memory_space<vmem>>, vector<1x1x256xf32>
    %4 = vector.shape_cast %3 : vector<1x1x256xf32> to vector<1x256xf32>
    %5 = vector.broadcast %4 : vector<1x256xf32> to vector<8x256xf32>
    %6 = arith.mulf %2, %5 : vector<8x256xf32>
    %c0_5 = arith.constant 0 : index
    %c0_6 = arith.constant 0 : index
    %7 = vector.load %arg9[%c0_5, %c0_6] : memref<72x256xf32, #tpu.memory_space<vmem>>, vector<8x256xf32>
    tpu.vector_store %arg9[%c0_5, %c0_6], %6 {strides = array<i32>} : memref<72x256xf32, #tpu.memory_space<vmem>>, vector<8x256xf32>,
    %c16_i32 = arith.constant 16 : i32
    %8 = tpu.dynamic_rotate %1 by %c16_i32 dim 1 : vector<8x256xf32>, i32 -> vector<8x256xf32>
    %c1 = arith.constant 1 : index
    %c0_7 = arith.constant 0 : index
    %c0_8 = arith.constant 0 : index
    %9 = vector.load %arg7[%c1, %c0_7, %c0_8] : memref<9x1x256xf32, #tpu.memory_space<vmem>>, vector<1x1x256xf32>
    %10 = vector.shape_cast %9 : vector<1x1x256xf32> to vector<1x256xf32>
    %11 = vector.broadcast %10 : vector<1x256xf32> to vector<8x256xf32>
    %12 = arith.mulf %8, %11 : vector<8x256xf32>
    %c8 = arith.constant 8 : index
    %c0_9 = arith.constant 0 : index
    %13 = vector.load %arg9[%c8, %c0_9] : memref<72x256xf32, #tpu.memory_space<vmem>>, vector<8x256xf32>
    tpu.vector_store %arg9[%c8, %c0_9], %12 {strides = array<i32>} : memref<72x256xf32, #tpu.memory_space<vmem>>, vector<8x256xf32>,
    %c15_i32 = arith.constant 15 : i32
    %14 = tpu.dynamic_rotate %1 by %c15_i32 dim 1 : vector<8x256xf32>, i32 -> vector<8x256xf32>
    %c2 = arith.constant 2 : index
    %c0_10 = arith.constant 0 : index
    %c0_11 = arith.constant 0 : index
    %15 = vector.load %arg7[%c2, %c0_10, %c0_11] : memref<9x1x256xf32, #tpu.memory_space<vmem>>, vector<1x1x256xf32>
    %16 = vector.shape_cast %15 : vector<1x1x256xf32> to vector<1x256xf32>
    %17 = vector.broadcast %16 : vector<1x256xf32> to vector<8x256xf32>
    %18 = arith.mulf %14, %17 : vector<8x256xf32>
    %c16 = arith.constant 16 : index
    %c0_12 = arith.constant 0 : index
    %19 = vector.load %arg9[%c16, %c0_12] : memref<72x256xf32, #tpu.memory_space<vmem>>, vector<8x256xf32>
    tpu.vector_store %arg9[%c16, %c0_12], %18 {strides = array<i32>} : memref<72x256xf32, #tpu.memory_space<vmem>>, vector<8x256xf32>,
    %c1_i32 = arith.constant 1 : i32
    %20 = tpu.dynamic_rotate %1 by %c1_i32 dim 1 : vector<8x256xf32>, i32 -> vector<8x256xf32>
    %c3 = arith.constant 3 : index
    %c0_13 = arith.constant 0 : index
    %c0_14 = arith.constant 0 : index
    %21 = vector.load %arg7[%c3, %c0_13, %c0_14] : memref<9x1x256xf32, #tpu.memory_space<vmem>>, vector<1x1x256xf32>
    %22 = vector.shape_cast %21 : vector<1x1x256xf32> to vector<1x256xf32>
    %23 = vector.broadcast %22 : vector<1x256xf32> to vector<8x256xf32>
    %24 = arith.mulf %20, %23 : vector<8x256xf32>
    %c24 = arith.constant 24 : index
    %c0_15 = arith.constant 0 : index
    %25 = vector.load %arg9[%c24, %c0_15] : memref<72x256xf32, #tpu.memory_space<vmem>>, vector<8x256xf32>
    tpu.vector_store %arg9[%c24, %c0_15], %24 {strides = array<i32>} : memref<72x256xf32, #tpu.memory_space<vmem>>, vector<8x256xf32>,
    %c32 = arith.constant 32 : index
    %c0_16 = arith.constant 0 : index
    %26 = vector.load %arg9[%c32, %c0_16] : memref<72x256xf32, #tpu.memory_space<vmem>>, vector<8x256xf32>
    tpu.vector_store %arg9[%c32, %c0_16], %1 {strides = array<i32>} : memref<72x256xf32, #tpu.memory_space<vmem>>, vector<8x256xf32>,
    %c255_i32 = arith.constant 255 : i32
    %27 = tpu.dynamic_rotate %1 by %c255_i32 dim 1 : vector<8x256xf32>, i32 -> vector<8x256xf32>
    %c5 = arith.constant 5 : index
    %c0_17 = arith.constant 0 : index
    %c0_18 = arith.constant 0 : index
    %28 = vector.load %arg7[%c5, %c0_17, %c0_18] : memref<9x1x256xf32, #tpu.memory_space<vmem>>, vector<1x1x256xf32>
    %29 = vector.shape_cast %28 : vector<1x1x256xf32> to vector<1x256xf32>
    %30 = vector.broadcast %29 : vector<1x256xf32> to vector<8x256xf32>
    %31 = arith.mulf %27, %30 : vector<8x256xf32>
    %c40 = arith.constant 40 : index
    %c0_19 = arith.constant 0 : index
    %32 = vector.load %arg9[%c40, %c0_19] : memref<72x256xf32, #tpu.memory_space<vmem>>, vector<8x256xf32>
    tpu.vector_store %arg9[%c40, %c0_19], %31 {strides = array<i32>} : memref<72x256xf32, #tpu.memory_space<vmem>>, vector<8x256xf32>,
    %c241_i32 = arith.constant 241 : i32
    %33 = tpu.dynamic_rotate %1 by %c241_i32 dim 1 : vector<8x256xf32>, i32 -> vector<8x256xf32>
    %c6 = arith.constant 6 : index
    %c0_20 = arith.constant 0 : index
    %c0_21 = arith.constant 0 : index
    %34 = vector.load %arg7[%c6, %c0_20, %c0_21] : memref<9x1x256xf32, #tpu.memory_space<vmem>>, vector<1x1x256xf32>
    %35 = vector.shape_cast %34 : vector<1x1x256xf32> to vector<1x256xf32>
    %36 = vector.broadcast %35 : vector<1x256xf32> to vector<8x256xf32>
    %37 = arith.mulf %33, %36 : vector<8x256xf32>
    %c48 = arith.constant 48 : index
    %c0_22 = arith.constant 0 : index
    %38 = vector.load %arg9[%c48, %c0_22] : memref<72x256xf32, #tpu.memory_space<vmem>>, vector<8x256xf32>
    tpu.vector_store %arg9[%c48, %c0_22], %37 {strides = array<i32>} : memref<72x256xf32, #tpu.memory_space<vmem>>, vector<8x256xf32>,
    %c240_i32 = arith.constant 240 : i32
    %39 = tpu.dynamic_rotate %1 by %c240_i32 dim 1 : vector<8x256xf32>, i32 -> vector<8x256xf32>
    %c7 = arith.constant 7 : index
    %c0_23 = arith.constant 0 : index
    %c0_24 = arith.constant 0 : index
    %40 = vector.load %arg7[%c7, %c0_23, %c0_24] : memref<9x1x256xf32, #tpu.memory_space<vmem>>, vector<1x1x256xf32>
    %41 = vector.shape_cast %40 : vector<1x1x256xf32> to vector<1x256xf32>
    %42 = vector.broadcast %41 : vector<1x256xf32> to vector<8x256xf32>
    %43 = arith.mulf %39, %42 : vector<8x256xf32>
    %c56 = arith.constant 56 : index
    %c0_25 = arith.constant 0 : index
    %44 = vector.load %arg9[%c56, %c0_25] : memref<72x256xf32, #tpu.memory_space<vmem>>, vector<8x256xf32>
    tpu.vector_store %arg9[%c56, %c0_25], %43 {strides = array<i32>} : memref<72x256xf32, #tpu.memory_space<vmem>>, vector<8x256xf32>,
    %c239_i32 = arith.constant 239 : i32
    %45 = tpu.dynamic_rotate %1 by %c239_i32 dim 1 : vector<8x256xf32>, i32 -> vector<8x256xf32>
    %c8_26 = arith.constant 8 : index
    %c0_27 = arith.constant 0 : index
    %c0_28 = arith.constant 0 : index
    %46 = vector.load %arg7[%c8_26, %c0_27, %c0_28] : memref<9x1x256xf32, #tpu.memory_space<vmem>>, vector<1x1x256xf32>
    %47 = vector.shape_cast %46 : vector<1x1x256xf32> to vector<1x256xf32>
    %48 = vector.broadcast %47 : vector<1x256xf32> to vector<8x256xf32>
    %49 = arith.mulf %45, %48 : vector<8x256xf32>
    %c64 = arith.constant 64 : index
    %c0_29 = arith.constant 0 : index
    %50 = vector.load %arg9[%c64, %c0_29] : memref<72x256xf32, #tpu.memory_space<vmem>>, vector<8x256xf32>
    tpu.vector_store %arg9[%c64, %c0_29], %49 {strides = array<i32>} : memref<72x256xf32, #tpu.memory_space<vmem>>, vector<8x256xf32>,
    %c0_30 = arith.constant 0 : index
    %c0_31 = arith.constant 0 : index
    %c0_32 = arith.constant 0 : index
    %51 = vector.load %arg2[%c0_30, %c0_31, %c0_32] : memref<2x8x72xf32, #tpu.memory_space<vmem>>, vector<1x8x72xf32>
    %52 = vector.shape_cast %51 : vector<1x8x72xf32> to vector<8x72xf32>
    %c0_33 = arith.constant 0 : index
    %c0_34 = arith.constant 0 : index
    %53 = vector.load %arg9[%c0_33, %c0_34] : memref<72x256xf32, #tpu.memory_space<vmem>>, vector<72x256xf32>
    %cst = arith.constant dense<0.000000e+00> : vector<8x256xf32>
    %54 = tpu.matmul %52, %53, %cst {dimension_numbers = #tpu.dot_dimension_numbers<[1], [0], [0], [1], [0, 0, 1, 1], [], []>, precision = #tpu.contract_precision<fp32>} : vector<8x72xf32>, vector<72x256xf32>, vector<8x256xf32> -> vector<8x256xf32>
    %c0_35 = arith.constant 0 : index
    %c0_36 = arith.constant 0 : index
    %c0_37 = arith.constant 0 : index
    %55 = vector.load %arg3[%c0_35, %c0_36, %c0_37] : memref<2x8x1xf32, #tpu.memory_space<vmem>>, vector<1x8x1xf32>
    %56 = vector.shape_cast %55 : vector<1x8x1xf32> to vector<8x1xf32>
    %57 = vector.broadcast %56 : vector<8x1xf32> to vector<8x256xf32>
    %58 = arith.addf %54, %57 : vector<8x256xf32>
    %cst_38 = arith.constant 0.000000e+00 : f32
    %59 = vector.broadcast %cst_38 : f32 to vector<8x256xf32>
    %60 = arith.maximumf %58, %59 : vector<8x256xf32>
    %c17_i32_39 = arith.constant 17 : i32
    %61 = tpu.dynamic_rotate %60 by %c17_i32_39 dim 1 : vector<8x256xf32>, i32 -> vector<8x256xf32>
    %c0_40 = arith.constant 0 : index
    %c0_41 = arith.constant 0 : index
    %c0_42 = arith.constant 0 : index
    %62 = vector.load %arg7[%c0_40, %c0_41, %c0_42] : memref<9x1x256xf32, #tpu.memory_space<vmem>>, vector<1x1x256xf32>
    %63 = vector.shape_cast %62 : vector<1x1x256xf32> to vector<1x256xf32>
    %64 = vector.broadcast %63 : vector<1x256xf32> to vector<8x256xf32>
    %65 = arith.mulf %61, %64 : vector<8x256xf32>
    %c0_43 = arith.constant 0 : index
    %c0_44 = arith.constant 0 : index
    %66 = vector.load %arg9[%c0_43, %c0_44] : memref<72x256xf32, #tpu.memory_space<vmem>>, vector<8x256xf32>
    tpu.vector_store %arg9[%c0_43, %c0_44], %65 {strides = array<i32>} : memref<72x256xf32, #tpu.memory_space<vmem>>, vector<8x256xf32>,
    %c16_i32_45 = arith.constant 16 : i32
    %67 = tpu.dynamic_rotate %60 by %c16_i32_45 dim 1 : vector<8x256xf32>, i32 -> vector<8x256xf32>
    %c1_46 = arith.constant 1 : index
    %c0_47 = arith.constant 0 : index
    %c0_48 = arith.constant 0 : index
    %68 = vector.load %arg7[%c1_46, %c0_47, %c0_48] : memref<9x1x256xf32, #tpu.memory_space<vmem>>, vector<1x1x256xf32>
    %69 = vector.shape_cast %68 : vector<1x1x256xf32> to vector<1x256xf32>
    %70 = vector.broadcast %69 : vector<1x256xf32> to vector<8x256xf32>
    %71 = arith.mulf %67, %70 : vector<8x256xf32>
    %c8_49 = arith.constant 8 : index
    %c0_50 = arith.constant 0 : index
    %72 = vector.load %arg9[%c8_49, %c0_50] : memref<72x256xf32, #tpu.memory_space<vmem>>, vector<8x256xf32>
    tpu.vector_store %arg9[%c8_49, %c0_50], %71 {strides = array<i32>} : memref<72x256xf32, #tpu.memory_space<vmem>>, vector<8x256xf32>,
    %c15_i32_51 = arith.constant 15 : i32
    %73 = tpu.dynamic_rotate %60 by %c15_i32_51 dim 1 : vector<8x256xf32>, i32 -> vector<8x256xf32>
    %c2_52 = arith.constant 2 : index
    %c0_53 = arith.constant 0 : index
    %c0_54 = arith.constant 0 : index
    %74 = vector.load %arg7[%c2_52, %c0_53, %c0_54] : memref<9x1x256xf32, #tpu.memory_space<vmem>>, vector<1x1x256xf32>
    %75 = vector.shape_cast %74 : vector<1x1x256xf32> to vector<1x256xf32>
    %76 = vector.broadcast %75 : vector<1x256xf32> to vector<8x256xf32>
    %77 = arith.mulf %73, %76 : vector<8x256xf32>
    %c16_55 = arith.constant 16 : index
    %c0_56 = arith.constant 0 : index
    %78 = vector.load %arg9[%c16_55, %c0_56] : memref<72x256xf32, #tpu.memory_space<vmem>>, vector<8x256xf32>
    tpu.vector_store %arg9[%c16_55, %c0_56], %77 {strides = array<i32>} : memref<72x256xf32, #tpu.memory_space<vmem>>, vector<8x256xf32>,
    %c1_i32_57 = arith.constant 1 : i32
    %79 = tpu.dynamic_rotate %60 by %c1_i32_57 dim 1 : vector<8x256xf32>, i32 -> vector<8x256xf32>
    %c3_58 = arith.constant 3 : index
    %c0_59 = arith.constant 0 : index
    %c0_60 = arith.constant 0 : index
    %80 = vector.load %arg7[%c3_58, %c0_59, %c0_60] : memref<9x1x256xf32, #tpu.memory_space<vmem>>, vector<1x1x256xf32>
    %81 = vector.shape_cast %80 : vector<1x1x256xf32> to vector<1x256xf32>
    %82 = vector.broadcast %81 : vector<1x256xf32> to vector<8x256xf32>
    %83 = arith.mulf %79, %82 : vector<8x256xf32>
    %c24_61 = arith.constant 24 : index
    %c0_62 = arith.constant 0 : index
    %84 = vector.load %arg9[%c24_61, %c0_62] : memref<72x256xf32, #tpu.memory_space<vmem>>, vector<8x256xf32>
    tpu.vector_store %arg9[%c24_61, %c0_62], %83 {strides = array<i32>} : memref<72x256xf32, #tpu.memory_space<vmem>>, vector<8x256xf32>,
    %c32_63 = arith.constant 32 : index
    %c0_64 = arith.constant 0 : index
    %85 = vector.load %arg9[%c32_63, %c0_64] : memref<72x256xf32, #tpu.memory_space<vmem>>, vector<8x256xf32>
    tpu.vector_store %arg9[%c32_63, %c0_64], %60 {strides = array<i32>} : memref<72x256xf32, #tpu.memory_space<vmem>>, vector<8x256xf32>,
    %c255_i32_65 = arith.constant 255 : i32
    %86 = tpu.dynamic_rotate %60 by %c255_i32_65 dim 1 : vector<8x256xf32>, i32 -> vector<8x256xf32>
    %c5_66 = arith.constant 5 : index
    %c0_67 = arith.constant 0 : index
    %c0_68 = arith.constant 0 : index
    %87 = vector.load %arg7[%c5_66, %c0_67, %c0_68] : memref<9x1x256xf32, #tpu.memory_space<vmem>>, vector<1x1x256xf32>
    %88 = vector.shape_cast %87 : vector<1x1x256xf32> to vector<1x256xf32>
    %89 = vector.broadcast %88 : vector<1x256xf32> to vector<8x256xf32>
    %90 = arith.mulf %86, %89 : vector<8x256xf32>
    %c40_69 = arith.constant 40 : index
    %c0_70 = arith.constant 0 : index
    %91 = vector.load %arg9[%c40_69, %c0_70] : memref<72x256xf32, #tpu.memory_space<vmem>>, vector<8x256xf32>
    tpu.vector_store %arg9[%c40_69, %c0_70], %90 {strides = array<i32>} : memref<72x256xf32, #tpu.memory_space<vmem>>, vector<8x256xf32>,
    %c241_i32_71 = arith.constant 241 : i32
    %92 = tpu.dynamic_rotate %60 by %c241_i32_71 dim 1 : vector<8x256xf32>, i32 -> vector<8x256xf32>
    %c6_72 = arith.constant 6 : index
    %c0_73 = arith.constant 0 : index
    %c0_74 = arith.constant 0 : index
    %93 = vector.load %arg7[%c6_72, %c0_73, %c0_74] : memref<9x1x256xf32, #tpu.memory_space<vmem>>, vector<1x1x256xf32>
    %94 = vector.shape_cast %93 : vector<1x1x256xf32> to vector<1x256xf32>
    %95 = vector.broadcast %94 : vector<1x256xf32> to vector<8x256xf32>
    %96 = arith.mulf %92, %95 : vector<8x256xf32>
    %c48_75 = arith.constant 48 : index
    %c0_76 = arith.constant 0 : index
    %97 = vector.load %arg9[%c48_75, %c0_76] : memref<72x256xf32, #tpu.memory_space<vmem>>, vector<8x256xf32>
    tpu.vector_store %arg9[%c48_75, %c0_76], %96 {strides = array<i32>} : memref<72x256xf32, #tpu.memory_space<vmem>>, vector<8x256xf32>,
    %c240_i32_77 = arith.constant 240 : i32
    %98 = tpu.dynamic_rotate %60 by %c240_i32_77 dim 1 : vector<8x256xf32>, i32 -> vector<8x256xf32>
    %c7_78 = arith.constant 7 : index
    %c0_79 = arith.constant 0 : index
    %c0_80 = arith.constant 0 : index
    %99 = vector.load %arg7[%c7_78, %c0_79, %c0_80] : memref<9x1x256xf32, #tpu.memory_space<vmem>>, vector<1x1x256xf32>
    %100 = vector.shape_cast %99 : vector<1x1x256xf32> to vector<1x256xf32>
    %101 = vector.broadcast %100 : vector<1x256xf32> to vector<8x256xf32>
    %102 = arith.mulf %98, %101 : vector<8x256xf32>
    %c56_81 = arith.constant 56 : index
    %c0_82 = arith.constant 0 : index
    %103 = vector.load %arg9[%c56_81, %c0_82] : memref<72x256xf32, #tpu.memory_space<vmem>>, vector<8x256xf32>
    tpu.vector_store %arg9[%c56_81, %c0_82], %102 {strides = array<i32>} : memref<72x256xf32, #tpu.memory_space<vmem>>, vector<8x256xf32>,
    %c239_i32_83 = arith.constant 239 : i32
    %104 = tpu.dynamic_rotate %60 by %c239_i32_83 dim 1 : vector<8x256xf32>, i32 -> vector<8x256xf32>
    %c8_84 = arith.constant 8 : index
    %c0_85 = arith.constant 0 : index
    %c0_86 = arith.constant 0 : index
    %105 = vector.load %arg7[%c8_84, %c0_85, %c0_86] : memref<9x1x256xf32, #tpu.memory_space<vmem>>, vector<1x1x256xf32>
    %106 = vector.shape_cast %105 : vector<1x1x256xf32> to vector<1x256xf32>
    %107 = vector.broadcast %106 : vector<1x256xf32> to vector<8x256xf32>
    %108 = arith.mulf %104, %107 : vector<8x256xf32>
    %c64_87 = arith.constant 64 : index
    %c0_88 = arith.constant 0 : index
    %109 = vector.load %arg9[%c64_87, %c0_88] : memref<72x256xf32, #tpu.memory_space<vmem>>, vector<8x256xf32>
    tpu.vector_store %arg9[%c64_87, %c0_88], %108 {strides = array<i32>} : memref<72x256xf32, #tpu.memory_space<vmem>>, vector<8x256xf32>,
    %c0_89 = arith.constant 0 : index
    %c0_90 = arith.constant 0 : index
    %c0_91 = arith.constant 0 : index
    %110 = vector.load %arg4[%c0_89, %c0_90, %c0_91] : memref<2x8x72xf32, #tpu.memory_space<vmem>>, vector<1x8x72xf32>
    %111 = vector.shape_cast %110 : vector<1x8x72xf32> to vector<8x72xf32>
    %c0_92 = arith.constant 0 : index
    %c0_93 = arith.constant 0 : index
    %112 = vector.load %arg9[%c0_92, %c0_93] : memref<72x256xf32, #tpu.memory_space<vmem>>, vector<72x256xf32>
    %cst_94 = arith.constant dense<0.000000e+00> : vector<8x256xf32>
    %113 = tpu.matmul %111, %112, %cst_94 {dimension_numbers = #tpu.dot_dimension_numbers<[1], [0], [0], [1], [0, 0, 1, 1], [], []>, precision = #tpu.contract_precision<fp32>} : vector<8x72xf32>, vector<72x256xf32>, vector<8x256xf32> -> vector<8x256xf32>
    %c0_95 = arith.constant 0 : index
    %c0_96 = arith.constant 0 : index
    %c0_97 = arith.constant 0 : index
    %114 = vector.load %arg5[%c0_95, %c0_96, %c0_97] : memref<2x8x1xf32, #tpu.memory_space<vmem>>, vector<1x8x1xf32>
    %115 = vector.shape_cast %114 : vector<1x8x1xf32> to vector<8x1xf32>
    %116 = vector.broadcast %115 : vector<8x1xf32> to vector<8x256xf32>
    %117 = arith.addf %113, %116 : vector<8x256xf32>
    %118 = arith.addf %1, %117 : vector<8x256xf32>
    %cst_98 = arith.constant 0.000000e+00 : f32
    %119 = vector.broadcast %cst_98 : f32 to vector<8x256xf32>
    %120 = arith.maximumf %118, %119 : vector<8x256xf32>
    %c17_i32_99 = arith.constant 17 : i32
    %121 = tpu.dynamic_rotate %120 by %c17_i32_99 dim 1 : vector<8x256xf32>, i32 -> vector<8x256xf32>
    %c0_100 = arith.constant 0 : index
    %c0_101 = arith.constant 0 : index
    %c0_102 = arith.constant 0 : index
    %122 = vector.load %arg7[%c0_100, %c0_101, %c0_102] : memref<9x1x256xf32, #tpu.memory_space<vmem>>, vector<1x1x256xf32>
    %123 = vector.shape_cast %122 : vector<1x1x256xf32> to vector<1x256xf32>
    %124 = vector.broadcast %123 : vector<1x256xf32> to vector<8x256xf32>
    %125 = arith.mulf %121, %124 : vector<8x256xf32>
    %c0_103 = arith.constant 0 : index
    %c0_104 = arith.constant 0 : index
    %126 = vector.load %arg9[%c0_103, %c0_104] : memref<72x256xf32, #tpu.memory_space<vmem>>, vector<8x256xf32>
    tpu.vector_store %arg9[%c0_103, %c0_104], %125 {strides = array<i32>} : memref<72x256xf32, #tpu.memory_space<vmem>>, vector<8x256xf32>,
    %c16_i32_105 = arith.constant 16 : i32
    %127 = tpu.dynamic_rotate %120 by %c16_i32_105 dim 1 : vector<8x256xf32>, i32 -> vector<8x256xf32>
    %c1_106 = arith.constant 1 : index
    %c0_107 = arith.constant 0 : index
    %c0_108 = arith.constant 0 : index
    %128 = vector.load %arg7[%c1_106, %c0_107, %c0_108] : memref<9x1x256xf32, #tpu.memory_space<vmem>>, vector<1x1x256xf32>
    %129 = vector.shape_cast %128 : vector<1x1x256xf32> to vector<1x256xf32>
    %130 = vector.broadcast %129 : vector<1x256xf32> to vector<8x256xf32>
    %131 = arith.mulf %127, %130 : vector<8x256xf32>
    %c8_109 = arith.constant 8 : index
    %c0_110 = arith.constant 0 : index
    %132 = vector.load %arg9[%c8_109, %c0_110] : memref<72x256xf32, #tpu.memory_space<vmem>>, vector<8x256xf32>
    tpu.vector_store %arg9[%c8_109, %c0_110], %131 {strides = array<i32>} : memref<72x256xf32, #tpu.memory_space<vmem>>, vector<8x256xf32>,
    %c15_i32_111 = arith.constant 15 : i32
    %133 = tpu.dynamic_rotate %120 by %c15_i32_111 dim 1 : vector<8x256xf32>, i32 -> vector<8x256xf32>
    %c2_112 = arith.constant 2 : index
    %c0_113 = arith.constant 0 : index
    %c0_114 = arith.constant 0 : index
    %134 = vector.load %arg7[%c2_112, %c0_113, %c0_114] : memref<9x1x256xf32, #tpu.memory_space<vmem>>, vector<1x1x256xf32>
    %135 = vector.shape_cast %134 : vector<1x1x256xf32> to vector<1x256xf32>
    %136 = vector.broadcast %135 : vector<1x256xf32> to vector<8x256xf32>
    %137 = arith.mulf %133, %136 : vector<8x256xf32>
    %c16_115 = arith.constant 16 : index
    %c0_116 = arith.constant 0 : index
    %138 = vector.load %arg9[%c16_115, %c0_116] : memref<72x256xf32, #tpu.memory_space<vmem>>, vector<8x256xf32>
    tpu.vector_store %arg9[%c16_115, %c0_116], %137 {strides = array<i32>} : memref<72x256xf32, #tpu.memory_space<vmem>>, vector<8x256xf32>,
    %c1_i32_117 = arith.constant 1 : i32
    %139 = tpu.dynamic_rotate %120 by %c1_i32_117 dim 1 : vector<8x256xf32>, i32 -> vector<8x256xf32>
    %c3_118 = arith.constant 3 : index
    %c0_119 = arith.constant 0 : index
    %c0_120 = arith.constant 0 : index
    %140 = vector.load %arg7[%c3_118, %c0_119, %c0_120] : memref<9x1x256xf32, #tpu.memory_space<vmem>>, vector<1x1x256xf32>
    %141 = vector.shape_cast %140 : vector<1x1x256xf32> to vector<1x256xf32>
    %142 = vector.broadcast %141 : vector<1x256xf32> to vector<8x256xf32>
    %143 = arith.mulf %139, %142 : vector<8x256xf32>
    %c24_121 = arith.constant 24 : index
    %c0_122 = arith.constant 0 : index
    %144 = vector.load %arg9[%c24_121, %c0_122] : memref<72x256xf32, #tpu.memory_space<vmem>>, vector<8x256xf32>
    tpu.vector_store %arg9[%c24_121, %c0_122], %143 {strides = array<i32>} : memref<72x256xf32, #tpu.memory_space<vmem>>, vector<8x256xf32>,
    %c32_123 = arith.constant 32 : index
    %c0_124 = arith.constant 0 : index
    %145 = vector.load %arg9[%c32_123, %c0_124] : memref<72x256xf32, #tpu.memory_space<vmem>>, vector<8x256xf32>
    tpu.vector_store %arg9[%c32_123, %c0_124], %120 {strides = array<i32>} : memref<72x256xf32, #tpu.memory_space<vmem>>, vector<8x256xf32>,
    %c255_i32_125 = arith.constant 255 : i32
    %146 = tpu.dynamic_rotate %120 by %c255_i32_125 dim 1 : vector<8x256xf32>, i32 -> vector<8x256xf32>
    %c5_126 = arith.constant 5 : index
    %c0_127 = arith.constant 0 : index
    %c0_128 = arith.constant 0 : index
    %147 = vector.load %arg7[%c5_126, %c0_127, %c0_128] : memref<9x1x256xf32, #tpu.memory_space<vmem>>, vector<1x1x256xf32>
    %148 = vector.shape_cast %147 : vector<1x1x256xf32> to vector<1x256xf32>
    %149 = vector.broadcast %148 : vector<1x256xf32> to vector<8x256xf32>
    %150 = arith.mulf %146, %149 : vector<8x256xf32>
    %c40_129 = arith.constant 40 : index
    %c0_130 = arith.constant 0 : index
    %151 = vector.load %arg9[%c40_129, %c0_130] : memref<72x256xf32, #tpu.memory_space<vmem>>, vector<8x256xf32>
    tpu.vector_store %arg9[%c40_129, %c0_130], %150 {strides = array<i32>} : memref<72x256xf32, #tpu.memory_space<vmem>>, vector<8x256xf32>,
    %c241_i32_131 = arith.constant 241 : i32
    %152 = tpu.dynamic_rotate %120 by %c241_i32_131 dim 1 : vector<8x256xf32>, i32 -> vector<8x256xf32>
    %c6_132 = arith.constant 6 : index
    %c0_133 = arith.constant 0 : index
    %c0_134 = arith.constant 0 : index
    %153 = vector.load %arg7[%c6_132, %c0_133, %c0_134] : memref<9x1x256xf32, #tpu.memory_space<vmem>>, vector<1x1x256xf32>
    %154 = vector.shape_cast %153 : vector<1x1x256xf32> to vector<1x256xf32>
    %155 = vector.broadcast %154 : vector<1x256xf32> to vector<8x256xf32>
    %156 = arith.mulf %152, %155 : vector<8x256xf32>
    %c48_135 = arith.constant 48 : index
    %c0_136 = arith.constant 0 : index
    %157 = vector.load %arg9[%c48_135, %c0_136] : memref<72x256xf32, #tpu.memory_space<vmem>>, vector<8x256xf32>
    tpu.vector_store %arg9[%c48_135, %c0_136], %156 {strides = array<i32>} : memref<72x256xf32, #tpu.memory_space<vmem>>, vector<8x256xf32>,
    %c240_i32_137 = arith.constant 240 : i32
    %158 = tpu.dynamic_rotate %120 by %c240_i32_137 dim 1 : vector<8x256xf32>, i32 -> vector<8x256xf32>
    %c7_138 = arith.constant 7 : index
    %c0_139 = arith.constant 0 : index
    %c0_140 = arith.constant 0 : index
    %159 = vector.load %arg7[%c7_138, %c0_139, %c0_140] : memref<9x1x256xf32, #tpu.memory_space<vmem>>, vector<1x1x256xf32>
    %160 = vector.shape_cast %159 : vector<1x1x256xf32> to vector<1x256xf32>
    %161 = vector.broadcast %160 : vector<1x256xf32> to vector<8x256xf32>
    %162 = arith.mulf %158, %161 : vector<8x256xf32>
    %c56_141 = arith.constant 56 : index
    %c0_142 = arith.constant 0 : index
    %163 = vector.load %arg9[%c56_141, %c0_142] : memref<72x256xf32, #tpu.memory_space<vmem>>, vector<8x256xf32>
    tpu.vector_store %arg9[%c56_141, %c0_142], %162 {strides = array<i32>} : memref<72x256xf32, #tpu.memory_space<vmem>>, vector<8x256xf32>,
    %c239_i32_143 = arith.constant 239 : i32
    %164 = tpu.dynamic_rotate %120 by %c239_i32_143 dim 1 : vector<8x256xf32>, i32 -> vector<8x256xf32>
    %c8_144 = arith.constant 8 : index
    %c0_145 = arith.constant 0 : index
    %c0_146 = arith.constant 0 : index
    %165 = vector.load %arg7[%c8_144, %c0_145, %c0_146] : memref<9x1x256xf32, #tpu.memory_space<vmem>>, vector<1x1x256xf32>
    %166 = vector.shape_cast %165 : vector<1x1x256xf32> to vector<1x256xf32>
    %167 = vector.broadcast %166 : vector<1x256xf32> to vector<8x256xf32>
    %168 = arith.mulf %164, %167 : vector<8x256xf32>
    %c64_147 = arith.constant 64 : index
    %c0_148 = arith.constant 0 : index
    %169 = vector.load %arg9[%c64_147, %c0_148] : memref<72x256xf32, #tpu.memory_space<vmem>>, vector<8x256xf32>
    tpu.vector_store %arg9[%c64_147, %c0_148], %168 {strides = array<i32>} : memref<72x256xf32, #tpu.memory_space<vmem>>, vector<8x256xf32>,
    %c1_149 = arith.constant 1 : index
    %c0_150 = arith.constant 0 : index
    %c0_151 = arith.constant 0 : index
    %170 = vector.load %arg2[%c1_149, %c0_150, %c0_151] : memref<2x8x72xf32, #tpu.memory_space<vmem>>, vector<1x8x72xf32>
    %171 = vector.shape_cast %170 : vector<1x8x72xf32> to vector<8x72xf32>
    %c0_152 = arith.constant 0 : index
    %c0_153 = arith.constant 0 : index
    %172 = vector.load %arg9[%c0_152, %c0_153] : memref<72x256xf32, #tpu.memory_space<vmem>>, vector<72x256xf32>
    %cst_154 = arith.constant dense<0.000000e+00> : vector<8x256xf32>
    %173 = tpu.matmul %171, %172, %cst_154 {dimension_numbers = #tpu.dot_dimension_numbers<[1], [0], [0], [1], [0, 0, 1, 1], [], []>, precision = #tpu.contract_precision<fp32>} : vector<8x72xf32>, vector<72x256xf32>, vector<8x256xf32> -> vector<8x256xf32>
    %c1_155 = arith.constant 1 : index
    %c0_156 = arith.constant 0 : index
    %c0_157 = arith.constant 0 : index
    %174 = vector.load %arg3[%c1_155, %c0_156, %c0_157] : memref<2x8x1xf32, #tpu.memory_space<vmem>>, vector<1x8x1xf32>
    %175 = vector.shape_cast %174 : vector<1x8x1xf32> to vector<8x1xf32>
    %176 = vector.broadcast %175 : vector<8x1xf32> to vector<8x256xf32>
    %177 = arith.addf %173, %176 : vector<8x256xf32>
    %cst_158 = arith.constant 0.000000e+00 : f32
    %178 = vector.broadcast %cst_158 : f32 to vector<8x256xf32>
    %179 = arith.maximumf %177, %178 : vector<8x256xf32>
    %c17_i32_159 = arith.constant 17 : i32
    %180 = tpu.dynamic_rotate %179 by %c17_i32_159 dim 1 : vector<8x256xf32>, i32 -> vector<8x256xf32>
    %c0_160 = arith.constant 0 : index
    %c0_161 = arith.constant 0 : index
    %c0_162 = arith.constant 0 : index
    %181 = vector.load %arg7[%c0_160, %c0_161, %c0_162] : memref<9x1x256xf32, #tpu.memory_space<vmem>>, vector<1x1x256xf32>
    %182 = vector.shape_cast %181 : vector<1x1x256xf32> to vector<1x256xf32>
    %183 = vector.broadcast %182 : vector<1x256xf32> to vector<8x256xf32>
    %184 = arith.mulf %180, %183 : vector<8x256xf32>
    %c0_163 = arith.constant 0 : index
    %c0_164 = arith.constant 0 : index
    %185 = vector.load %arg9[%c0_163, %c0_164] : memref<72x256xf32, #tpu.memory_space<vmem>>, vector<8x256xf32>
    tpu.vector_store %arg9[%c0_163, %c0_164], %184 {strides = array<i32>} : memref<72x256xf32, #tpu.memory_space<vmem>>, vector<8x256xf32>,
    %c16_i32_165 = arith.constant 16 : i32
    %186 = tpu.dynamic_rotate %179 by %c16_i32_165 dim 1 : vector<8x256xf32>, i32 -> vector<8x256xf32>
    %c1_166 = arith.constant 1 : index
    %c0_167 = arith.constant 0 : index
    %c0_168 = arith.constant 0 : index
    %187 = vector.load %arg7[%c1_166, %c0_167, %c0_168] : memref<9x1x256xf32, #tpu.memory_space<vmem>>, vector<1x1x256xf32>
    %188 = vector.shape_cast %187 : vector<1x1x256xf32> to vector<1x256xf32>
    %189 = vector.broadcast %188 : vector<1x256xf32> to vector<8x256xf32>
    %190 = arith.mulf %186, %189 : vector<8x256xf32>
    %c8_169 = arith.constant 8 : index
    %c0_170 = arith.constant 0 : index
    %191 = vector.load %arg9[%c8_169, %c0_170] : memref<72x256xf32, #tpu.memory_space<vmem>>, vector<8x256xf32>
    tpu.vector_store %arg9[%c8_169, %c0_170], %190 {strides = array<i32>} : memref<72x256xf32, #tpu.memory_space<vmem>>, vector<8x256xf32>,
    %c15_i32_171 = arith.constant 15 : i32
    %192 = tpu.dynamic_rotate %179 by %c15_i32_171 dim 1 : vector<8x256xf32>, i32 -> vector<8x256xf32>
    %c2_172 = arith.constant 2 : index
    %c0_173 = arith.constant 0 : index
    %c0_174 = arith.constant 0 : index
    %193 = vector.load %arg7[%c2_172, %c0_173, %c0_174] : memref<9x1x256xf32, #tpu.memory_space<vmem>>, vector<1x1x256xf32>
    %194 = vector.shape_cast %193 : vector<1x1x256xf32> to vector<1x256xf32>
    %195 = vector.broadcast %194 : vector<1x256xf32> to vector<8x256xf32>
    %196 = arith.mulf %192, %195 : vector<8x256xf32>
    %c16_175 = arith.constant 16 : index
    %c0_176 = arith.constant 0 : index
    %197 = vector.load %arg9[%c16_175, %c0_176] : memref<72x256xf32, #tpu.memory_space<vmem>>, vector<8x256xf32>
    tpu.vector_store %arg9[%c16_175, %c0_176], %196 {strides = array<i32>} : memref<72x256xf32, #tpu.memory_space<vmem>>, vector<8x256xf32>,
    %c1_i32_177 = arith.constant 1 : i32
    %198 = tpu.dynamic_rotate %179 by %c1_i32_177 dim 1 : vector<8x256xf32>, i32 -> vector<8x256xf32>
    %c3_178 = arith.constant 3 : index
    %c0_179 = arith.constant 0 : index
    %c0_180 = arith.constant 0 : index
    %199 = vector.load %arg7[%c3_178, %c0_179, %c0_180] : memref<9x1x256xf32, #tpu.memory_space<vmem>>, vector<1x1x256xf32>
    %200 = vector.shape_cast %199 : vector<1x1x256xf32> to vector<1x256xf32>
    %201 = vector.broadcast %200 : vector<1x256xf32> to vector<8x256xf32>
    %202 = arith.mulf %198, %201 : vector<8x256xf32>
    %c24_181 = arith.constant 24 : index
    %c0_182 = arith.constant 0 : index
    %203 = vector.load %arg9[%c24_181, %c0_182] : memref<72x256xf32, #tpu.memory_space<vmem>>, vector<8x256xf32>
    tpu.vector_store %arg9[%c24_181, %c0_182], %202 {strides = array<i32>} : memref<72x256xf32, #tpu.memory_space<vmem>>, vector<8x256xf32>,
    %c32_183 = arith.constant 32 : index
    %c0_184 = arith.constant 0 : index
    %204 = vector.load %arg9[%c32_183, %c0_184] : memref<72x256xf32, #tpu.memory_space<vmem>>, vector<8x256xf32>
    tpu.vector_store %arg9[%c32_183, %c0_184], %179 {strides = array<i32>} : memref<72x256xf32, #tpu.memory_space<vmem>>, vector<8x256xf32>,
    %c255_i32_185 = arith.constant 255 : i32
    %205 = tpu.dynamic_rotate %179 by %c255_i32_185 dim 1 : vector<8x256xf32>, i32 -> vector<8x256xf32>
    %c5_186 = arith.constant 5 : index
    %c0_187 = arith.constant 0 : index
    %c0_188 = arith.constant 0 : index
    %206 = vector.load %arg7[%c5_186, %c0_187, %c0_188] : memref<9x1x256xf32, #tpu.memory_space<vmem>>, vector<1x1x256xf32>
    %207 = vector.shape_cast %206 : vector<1x1x256xf32> to vector<1x256xf32>
    %208 = vector.broadcast %207 : vector<1x256xf32> to vector<8x256xf32>
    %209 = arith.mulf %205, %208 : vector<8x256xf32>
    %c40_189 = arith.constant 40 : index
    %c0_190 = arith.constant 0 : index
    %210 = vector.load %arg9[%c40_189, %c0_190] : memref<72x256xf32, #tpu.memory_space<vmem>>, vector<8x256xf32>
    tpu.vector_store %arg9[%c40_189, %c0_190], %209 {strides = array<i32>} : memref<72x256xf32, #tpu.memory_space<vmem>>, vector<8x256xf32>,
    %c241_i32_191 = arith.constant 241 : i32
    %211 = tpu.dynamic_rotate %179 by %c241_i32_191 dim 1 : vector<8x256xf32>, i32 -> vector<8x256xf32>
    %c6_192 = arith.constant 6 : index
    %c0_193 = arith.constant 0 : index
    %c0_194 = arith.constant 0 : index
    %212 = vector.load %arg7[%c6_192, %c0_193, %c0_194] : memref<9x1x256xf32, #tpu.memory_space<vmem>>, vector<1x1x256xf32>
    %213 = vector.shape_cast %212 : vector<1x1x256xf32> to vector<1x256xf32>
    %214 = vector.broadcast %213 : vector<1x256xf32> to vector<8x256xf32>
    %215 = arith.mulf %211, %214 : vector<8x256xf32>
    %c48_195 = arith.constant 48 : index
    %c0_196 = arith.constant 0 : index
    %216 = vector.load %arg9[%c48_195, %c0_196] : memref<72x256xf32, #tpu.memory_space<vmem>>, vector<8x256xf32>
    tpu.vector_store %arg9[%c48_195, %c0_196], %215 {strides = array<i32>} : memref<72x256xf32, #tpu.memory_space<vmem>>, vector<8x256xf32>,
    %c240_i32_197 = arith.constant 240 : i32
    %217 = tpu.dynamic_rotate %179 by %c240_i32_197 dim 1 : vector<8x256xf32>, i32 -> vector<8x256xf32>
    %c7_198 = arith.constant 7 : index
    %c0_199 = arith.constant 0 : index
    %c0_200 = arith.constant 0 : index
    %218 = vector.load %arg7[%c7_198, %c0_199, %c0_200] : memref<9x1x256xf32, #tpu.memory_space<vmem>>, vector<1x1x256xf32>
    %219 = vector.shape_cast %218 : vector<1x1x256xf32> to vector<1x256xf32>
    %220 = vector.broadcast %219 : vector<1x256xf32> to vector<8x256xf32>
    %221 = arith.mulf %217, %220 : vector<8x256xf32>
    %c56_201 = arith.constant 56 : index
    %c0_202 = arith.constant 0 : index
    %222 = vector.load %arg9[%c56_201, %c0_202] : memref<72x256xf32, #tpu.memory_space<vmem>>, vector<8x256xf32>
    tpu.vector_store %arg9[%c56_201, %c0_202], %221 {strides = array<i32>} : memref<72x256xf32, #tpu.memory_space<vmem>>, vector<8x256xf32>,
    %c239_i32_203 = arith.constant 239 : i32
    %223 = tpu.dynamic_rotate %179 by %c239_i32_203 dim 1 : vector<8x256xf32>, i32 -> vector<8x256xf32>
    %c8_204 = arith.constant 8 : index
    %c0_205 = arith.constant 0 : index
    %c0_206 = arith.constant 0 : index
    %224 = vector.load %arg7[%c8_204, %c0_205, %c0_206] : memref<9x1x256xf32, #tpu.memory_space<vmem>>, vector<1x1x256xf32>
    %225 = vector.shape_cast %224 : vector<1x1x256xf32> to vector<1x256xf32>
    %226 = vector.broadcast %225 : vector<1x256xf32> to vector<8x256xf32>
    %227 = arith.mulf %223, %226 : vector<8x256xf32>
    %c64_207 = arith.constant 64 : index
    %c0_208 = arith.constant 0 : index
    %228 = vector.load %arg9[%c64_207, %c0_208] : memref<72x256xf32, #tpu.memory_space<vmem>>, vector<8x256xf32>
    tpu.vector_store %arg9[%c64_207, %c0_208], %227 {strides = array<i32>} : memref<72x256xf32, #tpu.memory_space<vmem>>, vector<8x256xf32>,
    %c1_209 = arith.constant 1 : index
    %c0_210 = arith.constant 0 : index
    %c0_211 = arith.constant 0 : index
    %229 = vector.load %arg4[%c1_209, %c0_210, %c0_211] : memref<2x8x72xf32, #tpu.memory_space<vmem>>, vector<1x8x72xf32>
    %230 = vector.shape_cast %229 : vector<1x8x72xf32> to vector<8x72xf32>
    %c0_212 = arith.constant 0 : index
    %c0_213 = arith.constant 0 : index
    %231 = vector.load %arg9[%c0_212, %c0_213] : memref<72x256xf32, #tpu.memory_space<vmem>>, vector<72x256xf32>
    %cst_214 = arith.constant dense<0.000000e+00> : vector<8x256xf32>
    %232 = tpu.matmul %230, %231, %cst_214 {dimension_numbers = #tpu.dot_dimension_numbers<[1], [0], [0], [1], [0, 0, 1, 1], [], []>, precision = #tpu.contract_precision<fp32>} : vector<8x72xf32>, vector<72x256xf32>, vector<8x256xf32> -> vector<8x256xf32>
    %c1_215 = arith.constant 1 : index
    %c0_216 = arith.constant 0 : index
    %c0_217 = arith.constant 0 : index
    %233 = vector.load %arg5[%c1_215, %c0_216, %c0_217] : memref<2x8x1xf32, #tpu.memory_space<vmem>>, vector<1x8x1xf32>
    %234 = vector.shape_cast %233 : vector<1x8x1xf32> to vector<8x1xf32>
    %235 = vector.broadcast %234 : vector<8x1xf32> to vector<8x256xf32>
    %236 = arith.addf %232, %235 : vector<8x256xf32>
    %237 = arith.addf %120, %236 : vector<8x256xf32>
    %cst_218 = arith.constant 0.000000e+00 : f32
    %238 = vector.broadcast %cst_218 : f32 to vector<8x256xf32>
    %239 = arith.maximumf %237, %238 : vector<8x256xf32>
    %c0_219 = arith.constant 0 : index
    %c0_220 = arith.constant 0 : index
    %240 = vector.load %arg6[%c0_219, %c0_220] : memref<8x1xf32, #tpu.memory_space<vmem>>, vector<8x1xf32>
    %241 = vector.broadcast %240 : vector<8x1xf32> to vector<8x256xf32>
    %242 = arith.subf %239, %241 : vector<8x256xf32>
    %cst_221 = arith.constant 0.000000e+00 : f32
    %243 = vector.broadcast %cst_221 : f32 to vector<8x256xf32>
    %244 = arith.maximumf %242, %243 : vector<8x256xf32>
    %c0_222 = arith.constant 0 : index
    %c0_223 = arith.constant 0 : index
    %c0_224 = arith.constant 0 : index
    %245 = vector.load %arg8[%c0_222, %c0_223, %c0_224] : memref<1x8x256xf32, #tpu.memory_space<vmem>>, vector<1x8x256xf32>
    %246 = vector.shape_cast %245 : vector<1x8x256xf32> to vector<8x256xf32>
    %247 = vector.shape_cast %244 : vector<8x256xf32> to vector<1x8x256xf32>
    tpu.vector_store %arg8[%c0_222, %c0_223, %c0_224], %247 {strides = array<i32>} : memref<1x8x256xf32, #tpu.memory_space<vmem>>, vector<1x8x256xf32>,
    return
  }
  func.func @transform_0(%arg0: i32) -> (i32, i32, i32) {
    %c0_i32 = arith.constant 0 : i32
    %c0_i32_0 = arith.constant 0 : i32
    %c0_i32_1 = arith.constant 0 : i32
    return %arg0, %c0_i32, %c0_i32_0 : i32, i32, i32
  }
  func.func @transform_1(%arg0: i32) -> (i32, i32, i32) {
    %c0_i32 = arith.constant 0 : i32
    %c0_i32_0 = arith.constant 0 : i32
    %c0_i32_1 = arith.constant 0 : i32
    %c0_i32_2 = arith.constant 0 : i32
    return %c0_i32, %c0_i32_0, %c0_i32_1 : i32, i32, i32
  }
  func.func @transform_2(%arg0: i32) -> (i32, i32, i32) {
    %c0_i32 = arith.constant 0 : i32
    %c0_i32_0 = arith.constant 0 : i32
    %c0_i32_1 = arith.constant 0 : i32
    %c0_i32_2 = arith.constant 0 : i32
    return %c0_i32, %c0_i32_0, %c0_i32_1 : i32, i32, i32
  }
  func.func @transform_3(%arg0: i32) -> (i32, i32, i32) {
    %c0_i32 = arith.constant 0 : i32
    %c0_i32_0 = arith.constant 0 : i32
    %c0_i32_1 = arith.constant 0 : i32
    %c0_i32_2 = arith.constant 0 : i32
    return %c0_i32, %c0_i32_0, %c0_i32_1 : i32, i32, i32
  }
  func.func @transform_4(%arg0: i32) -> (i32, i32, i32) {
    %c0_i32 = arith.constant 0 : i32
    %c0_i32_0 = arith.constant 0 : i32
    %c0_i32_1 = arith.constant 0 : i32
    %c0_i32_2 = arith.constant 0 : i32
    return %c0_i32, %c0_i32_0, %c0_i32_1 : i32, i32, i32
  }
  func.func @transform_5(%arg0: i32) -> (i32, i32) {
    %c0_i32 = arith.constant 0 : i32
    %c0_i32_0 = arith.constant 0 : i32
    %c0_i32_1 = arith.constant 0 : i32
    return %c0_i32, %c0_i32_0 : i32, i32
  }
  func.func @transform_6(%arg0: i32) -> (i32, i32, i32) {
    %c0_i32 = arith.constant 0 : i32
    %c0_i32_0 = arith.constant 0 : i32
    %c0_i32_1 = arith.constant 0 : i32
    %c0_i32_2 = arith.constant 0 : i32
    return %c0_i32, %c0_i32_0, %c0_i32_1 : i32, i32, i32
  }
  func.func @transform_7(%arg0: i32) -> (i32, i32, i32) {
    %c0_i32 = arith.constant 0 : i32
    %c0_i32_0 = arith.constant 0 : i32
    %c0_i32_1 = arith.constant 0 : i32
    return %arg0, %c0_i32, %c0_i32_0 : i32, i32, i32
  }
}

</mosaic_0001>

<bundles_post_ra>
// kernel: mnet_forward.1
= control target key start
LH: loop header
LB: loop body
LE: loop exit
PB: predicated region body
PF: predicated region fallthrough
CT: control target
= control target key end

     0   :  { %s3138_s24 = smov 0   ;;  %s4880_s0 = inlined_call_operand.vmem [shape: f32[2,8,256], index: 0, kind: input, shape index: {}, may-alias: {0,7}]   ;;  %s4881_s1 = inlined_call_operand.vmem [shape: f32[2,8,72], index: 1, kind: input, shape index: {}]   ;;  %s4882_s2 = inlined_call_operand.vmem [shape: f32[2,8,1], index: 2, kind: input, shape index: {}]   ;;  %s4883_s3 = inlined_call_operand.vmem [shape: f32[2,8,72], index: 3, kind: input, shape index: {}]   ;;  %s4884_s4 = inlined_call_operand.vmem [shape: f32[2,8,1], index: 4, kind: input, shape index: {}]   ;;  %s4885_s5 = inlined_call_operand.vmem [shape: f32[8,1], index: 5, kind: input, shape index: {}]   ;;  %s4886_s6 = inlined_call_operand.vmem [shape: f32[9,1,256], index: 6, kind: input, shape index: {}]   ;;  %s4887_s7 = inlined_call_operand.vmem [shape: f32[2,8,256], index: 7, kind: output, shape index: {}, may-alias: {0,7}]  }
   0x1 LB: > { %s3014_s25 = sadd.s32 4294967295, %s3087_s24   ;;  %p3018_p0 = scmp.ge.s32.totalorder %s3087_s24, 1  ;;  %s3087_s24 = sphi %s3138_s24, %s17_s24  }
   0x2   : > { %p237_p1 = scmp.lt.s32.totalorder %s3087_s24, 3 }
   0x4   : > { %p238_p2 = pnand %p3018_p0, %p237_p1 }
   0x5   : > { %p269_p3 = scmp.lt.s32.totalorder (!%p238_p2), %s3014_s25, 1  ;;  %s3089_s30 = smov (!%p238_p2), 112  }
   0x6   : > { %241 = sbr.rel (%p238_p2) target bundleno = 1333 (0x535), region = 48  ;;  %s3090_s8 = smov (!%p238_p2), 111  }
   0x7   : > { %s3091_s9 = smov (!%p238_p2), 113   ;;  %s3092_s10 = smov (!%p238_p2), 127  }
   0x8   : > { %s3093_s11 = smov (!%p238_p2), 1   ;;  %s3094_s12 = smov (!%p238_p2), 15  }
   0x9   : > { %s3095_s13 = smov (!%p238_p2), 16   ;;  %s3096_s14 = smov (!%p238_p2), 17  }
   0xb   : > { %s4889_s25 = smov (!%p269_p3, %s3014_s25), 1  ;;  %v285_v3 = vlaneseq  ;;  %v3199_v5 = vld [vmem:[%s4886_s6 + $0xc] sm:$0x3]  ;;  %v3212_v11 = vld [vmem:[%s4886_s6 + $0xe] sm:$0x3]  ;;  %vm453_vm6 = vcmask 588800  }
   0xc   : > { %s3057_s26 = sshll.u32 %s4889_s25, 4  ;;  %v384_v9 = vperm.slane %v3199_v5, 0  ;;  %v3217_v12 = vld [vmem:[%s4886_s6 + $0x10] sm:$0x3]  ;;  %v402_v14 = vperm.slane %v3212_v11, 0  ;;  %v385_v42 = vperm.slane %v3199_v5, 1 }
   0xd   : > { %s3154_s29 = scalar_lea.vmem %s4880_s0, %s3057_s26  ;;  %v3194_v4 = vand.u32 127, %v285_v3  ;;  %v420_v15 = vperm.slane %v3217_v12, 0  ;;  %v3234_v23 = vld [vmem:[%s4886_s6 + $0xa] sm:$0x3]  ;;  %v3281_v41 = vld [vmem:[%s4886_s6 + $0x6] sm:$0x3] }
   0xe   : > { %v3157_v0 = vld [vmem:[%s3154_s29] sm:$0xff]  ;;  %v3166_v1 = vld [vmem:[%s3154_s29 + $0x8] sm:$0xff]  ;;  %v366_v30 = vperm.slane %v3234_v23, 0  ;;  %v421_v49 = vperm.slane %v3217_v12, 1  ;;  %v346_v50 = vperm.slane %v3281_v41, 0  ;;  %v403_v57 = vperm.slane %v3212_v11, 1 }
   0xf   : > { %392 = vrot.lane.b32.xlu1 %v3157_v0, %s3089_s30  ;;  %410 = vrot.lane.b32.xlu0 %v3157_v0, %s3090_s8  ;;  %vm378_vm0 = vcmp.lt.s32.totalorder %v3194_v4, 113  ;;  %vm396_vm1 = vcmp.lt.s32.totalorder %v3194_v4, 112  ;;  %vm414_vm2 = vcmp.lt.s32.totalorder %v3194_v4, 111  ;;  %v3246_v28 = vand.u32 4294901760, %v3157_v0  ;;  %v3291_v44 = vld [vmem:[%s4886_s6 + $0x4] sm:$0x3] }
  0x10   : > { %374 = vrot.lane.b32.xlu2 %v3157_v0, %s3091_s9  ;;  %vm360_vm3 = vcmp.lt.s32.totalorder %v3194_v4, 127  ;;  %vm340_vm4 = vcmp.lt.s32.totalorder %v3194_v4, 1  ;;  %vm322_vm5 = vcmp.lt.s32.totalorder %v3194_v4, 15  ;;  %v328_v54 = vperm.slane %v3291_v44, 0 }
  0x11   : > { %v3271_v38 = vsub.f32 %v3157_v0, %v3246_v28  ;;  %v367_v11 = vperm.slane %v3234_v23, 1  ;;  %vm304_vm7 = vcmp.lt.s32.totalorder %v3194_v4, 16  ;;  %vm287_vm8 = vcmp.lt.s32.totalorder %v3194_v4, 17 }
  0x13   : > { %v524_v51 = vand.u32 4294901760, %v3271_v38 }
  0x15   : > { %v525_v3 = vsub.f32 %v3271_v38, %v524_v51 }
  0x17   : > { %394 = vrot.lane.b32.xlu1 %v3166_v1, %s3089_s30  ;;  %412 = vrot.lane.b32.xlu0 %v3166_v1, %s3090_s8 }
  0x18   : > { %376 = vrot.lane.b32.xlu2 %v3166_v1, %s3091_s9 }
  0x1f   : > { %358 = vrot.lane.b32.xlu1 %v3166_v1, %s3092_s10  ;;  %356 = vrot.lane.b32.xlu0 %v3157_v0, %s3092_s10 }
  0x20   : > { %336 = vrot.lane.b32.xlu2 %v3157_v0, %s3093_s11 }
  0x27   : > { %318 = vrot.lane.b32.xlu1 %v3157_v0, %s3094_s12  ;;  %338 = vrot.lane.b32.xlu0 %v3166_v1, %s3093_s11 }
  0x28   : > { %320 = vrot.lane.b32.xlu2 %v3166_v1, %s3094_s12 }
  0x2f   : > { %302 = vrot.lane.b32.xlu1 %v3166_v1, %s3095_s13  ;;  %300 = vrot.lane.b32.xlu0 %v3157_v0, %s3095_s13 }
  0x30   : > { %281 = vrot.lane.b32.xlu2 %v3157_v0, %s3096_s14 }
  0x37   : > { %283 = vrot.lane.b32.xlu0 %v3166_v1, %s3096_s14 }
  0x6a   : > { %v375_v2 = vpop.permute.xlu2 %374 }
  0x72   : > { %v377_v6 = vpop.permute.xlu2 %376 }
  0x73   : > { %v379_v10 = vsel %vm378_vm0, %v375_v2, %v377_v6  ;;  %v380_v45 = vsel %vm378_vm0, %v377_v6, %v375_v2 }
  0x74   : > { %v388_v13 = vmul.f32 %v384_v9, %v379_v10  ;;  %v389_v56 = vmul.f32 %v385_v42, %v380_v45 }
  0x76   : > { %v3223_v16 = vand.u32 4294901760, %v388_v13  ;;  %v3339_v9 = vand.u32 4294901760, %v389_v56 }
  0x78   : > { %v3243_v27 = vsub.f32 %v388_v13, %v3223_v16  ;;  %v3350_v13 = vld [vmem:[%s4886_s6 + $0x2] sm:$0x3] }
  0x7a   : > { %v3240_v26 = vpop.permute.xlu2 %336  ;;  %v512_v35 = vand.u32 4294901760, %v3243_v27 }
  0x7c   : > { %v513_v48 = vsub.f32 %v3243_v27, %v512_v35 }
  0x7e   : > { %v514_v62 = vand.u32 4294901760, %v513_v48 }
  0x81   : > { %v3202_v7 = vpop.permute.xlu1 %392  ;;  %v3204_v8 = vpop.permute.xlu0 %410 }
  0x82   : > { %v3311_v55 = vpop.permute.xlu2 %320 }
  0x89   : > { %v395_v17 = vpop.permute.xlu1 %394  ;;  %v413_v18 = vpop.permute.xlu0 %412 }
  0x8a   : > { %v397_v19 = vsel %vm396_vm1, %v3202_v7, %v395_v17  ;;  %v415_v20 = vsel %vm414_vm2, %v3204_v8, %v413_v18  ;;  %v416_v58 = vsel %vm414_vm2, %v413_v18, %v3204_v8  ;;  %v398_v59 = vsel %vm396_vm1, %v395_v17, %v3202_v7  ;;  %v428_v8 = vld [vmem:[%s4881_s1] sm:$0xff] }
  0x8b   : > { %v406_v21 = vmul.f32 %v402_v14, %v397_v19  ;;  %v424_v22 = vmul.f32 %v420_v15, %v415_v20  ;;  %v425_v5 = vmul.f32 %v421_v49, %v416_v58  ;;  %v407_v10 = vmul.f32 %v403_v57, %v398_v59 }
  0x8c   : > { %v526_v19 = vand.u32 4294901760, %v525_v3  ;;  %v455_v20 = vsel %vm453_vm6, %v428_v8, 0  ;;  %v282_v8 = vpop.permute.xlu2 %281 }
  0x8d   : > { %v3236_v24 = vand.u32 4294901760, %v406_v21  ;;  %v3238_v25 = vand.u32 4294901760, %v424_v22 }
  0x8f   : > { %465 = vmatpush.msra.mxu0 %v3238_v25  ;;  %605 = vmatpush.msra.mxu3 %v3238_v25  ;;  %v3251_v29 = vsub.f32 %v424_v22, %v3238_v25  ;;  %v3256_v31 = vsub.f32 %v406_v21, %v3236_v24  ;;  %v3360_v21 = vand.u32 4294901760, %v425_v5  ;;  %v310_v22 = vperm.slane %v3350_v13, 0 }
  0x91   : > { %v3258_v32 = vpop.permute.xlu1 %358  ;;  %467 = vmatpush.msra.mxu0 %v3236_v24  ;;  %566 = vmatpush.msra.mxu2 %v3251_v29  ;;  %v357_v33 = vpop.permute.xlu0 %356  ;;  %v500_v34 = vand.u32 4294901760, %v3251_v29  ;;  %v506_v37 = vand.u32 4294901760, %v3256_v31 }
  0x92   : > { %607 = vmatpush.msra.mxu3 %v3236_v24  ;;  %v361_v36 = vsel %vm360_vm3, %v357_v33, %v3258_v32  ;;  %v362_v14 = vsel %vm360_vm3, %v3258_v32, %v357_v33  ;;  %v3372_v32 = vand.u32 4294901760, %v407_v10 }
  0x93   : > { %v370_v39 = vmul.f32 %v366_v30, %v361_v36  ;;  %469 = vmatpush.msra.mxu0 %v3223_v16  ;;  %569 = vmatpush.msra.mxu2 %v3256_v31  ;;  %v501_v40 = vsub.f32 %v3251_v29, %v500_v34  ;;  %v507_v43 = vsub.f32 %v3256_v31, %v506_v37 }
  0x94   : > { %609 = vmatpush.msra.mxu3 %v3223_v16  ;;  %v3370_v30 = vsub.f32 %v389_v56, %v3339_v9  ;;  %v371_v33 = vmul.f32 %v367_v11, %v362_v14  ;;  %v290_v56 = vld [vmem:[%s4886_s6] sm:$0x3]  ;;  %v3406_v57 = vsub.f32 %v407_v10, %v3372_v32 }
  0x95   : > { %v3295_v46 = vand.u32 4294901760, %v370_v39  ;;  %572 = vmatpush.msra.mxu2 %v3243_v27  ;;  %v502_v47 = vand.u32 4294901760, %v501_v40  ;;  %v508_v52 = vand.u32 4294901760, %v507_v43  ;;  %v329_v40 = vperm.slane %v3291_v44, 1 }
  0x96   : > { %v3392_v44 = vand.u32 4294901760, %v3166_v1  ;;  %v3408_v58 = vand.u32 4294901760, %v371_v33 }
  0x97   : > { %471 = vmatpush.msra.mxu0 %v3295_v46  ;;  %503 = vmatpush.msra.mxu1 %v502_v47  ;;  %v3307_v53 = vsub.f32 %v370_v39, %v3295_v46  ;;  %v347_v39 = vperm.slane %v3281_v41, 1  ;;  %v3382_v47 = vand.u32 4294901760, %v455_v20 }
  0x98   : > { %611 = vmatpush.msra.mxu3 %v3295_v46 }
  0x99   : > { %v3321_v60 = vpop.permute.xlu1 %318  ;;  %509 = vmatpush.msra.mxu1 %v508_v52  ;;  %575 = vmatpush.msra.mxu2 %v3307_v53  ;;  %v339_v61 = vpop.permute.xlu0 %338  ;;  %v518_v63 = vand.u32 4294901760, %v3307_v53  ;;  %v311_v52 = vperm.slane %v3350_v13, 1  ;;  %v3420_v3 = vsub.f32 %v455_v20, %v3382_v47  ;;  %v756_v13 = vand.u32 4294901760, %v3406_v57 }
  0x9a   : > { %v342_v0 = vsel %vm340_vm4, %v339_v61, %v3240_v26  ;;  %v324_v2 = vsel %vm322_vm5, %v3311_v55, %v3321_v60  ;;  %473 = vmatpush.msra.mxu0 %v3246_v28  ;;  %613 = vmatpush.msra.mxu3 %v3246_v28  ;;  %v341_v48 = vsel %vm340_vm4, %v3240_v26, %v339_v61  ;;  %v762_v20 = vand.u32 4294901760, %v3370_v30 }
  0x9b   : > { %v350_v6 = vmul.f32 %v346_v50, %v342_v0  ;;  %v332_v7 = vmul.f32 %v328_v54, %v324_v2  ;;  %515 = vmatpush.msra.mxu1 %v514_v62  ;;  %v519_v12 = vsub.f32 %v3307_v53, %v518_v63  ;;  %578 = vmatpush.msra.mxu2 %v3271_v38 }
  0x9c   : > { %v3395_v50 = vsub.f32 %v425_v5, %v3360_v21  ;;  %v323_v59 = vsel %vm322_vm5, %v3321_v60, %v3311_v55  ;;  %v351_v62 = vmul.f32 %v347_v39, %v341_v48  ;;  %v292_v5 = vperm.slane %v290_v56, 0 }
  0x9d   : > { %v3355_v15 = vand.u32 4294901760, %v350_v6  ;;  %v3357_v17 = vand.u32 4294901760, %v332_v7  ;;  %v520_v18 = vand.u32 4294901760, %v519_v12  ;;  %v333_v55 = vmul.f32 %v329_v40, %v323_v59 }
  0x9e   : > { %v750_v11 = vand.u32 4294901760, %v3395_v50  ;;  %v3435_v12 = vsub.f32 %v371_v33, %v3408_v58  ;;  %v3439_v14 = vand.u32 4294901760, %v351_v62 }
  0x9f   : > { %475 = vmatpush.msra.mxu0 %v3355_v15  ;;  %615 = vmatpush.msra.mxu3 %v3355_v15  ;;  %v3367_v23 = vsub.f32 %v350_v6, %v3355_v15  ;;  %v3375_v36 = vsub.f32 %v332_v7, %v3357_v17  ;;  %v3425_v7 = vsub.f32 %v3166_v1, %v3392_v44  ;;  %v293_v1 = vperm.slane %v290_v56, 1 }
  0xa0   : > { %521 = vmatpush.msra.mxu1 %v520_v18  ;;  %v768_v56 = vand.u32 4294901760, %v3435_v12  ;;  %v3465_v59 = vsub.f32 %v351_v62, %v3439_v14 }
  0xa1   : > { %v303_v42 = vpop.permute.xlu1 %302  ;;  %v301_v43 = vpop.permute.xlu0 %300  ;;  %581 = vmatpush.msra.mxu2 %v3367_v23  ;;  %477 = vmatpush.msra.mxu0 %v3357_v17  ;;  %v530_v45 = vand.u32 4294901760, %v3367_v23  ;;  %v536_v41 = vand.u32 4294901760, %v3375_v36 }
  0xa2   : > { %v306_v49 = vsel %vm304_vm7, %v303_v42, %v301_v43  ;;  %527 = vmatpush.msra.mxu1 %v526_v19  ;;  %617 = vmatpush.msra.mxu3 %v3357_v17  ;;  %v305_v60 = vsel %vm304_vm7, %v301_v43, %v303_v42  ;;  %v774_v42 = vand.u32 4294901760, %v3425_v7  ;;  %v3452_v43 = vand.u32 4294901760, %v333_v55 }
  0xa3   : > { %v314_v54 = vmul.f32 %v310_v22, %v306_v49  ;;  %584 = vmatpush.msra.mxu2 %v3375_v36  ;;  %v531_v26 = vsub.f32 %v3367_v23, %v530_v45  ;;  %v537_v61 = vsub.f32 %v3375_v36, %v536_v41  ;;  %v3445_v22 = vand.u32 4294901760, %v3420_v3 }
  0xa4   : > { %v315_v33 = vmul.f32 %v311_v52, %v305_v60 }
  0xa5   : > { %v3417_v0 = vand.u32 4294901760, %v314_v54  ;;  %v532_v2 = vand.u32 4294901760, %v531_v26  ;;  %v538_v6 = vand.u32 4294901760, %v537_v61  ;;  %v757_v26 = vsub.f32 %v3406_v57, %v756_v13 }
  0xa6   : > { %v3471_v60 = vand.u32 4294901760, %v315_v33 }
  0xa7   : > { %479 = vmatpush.msra.mxu0 %v3417_v0  ;;  %533 = vmatpush.msra.mxu1 %v532_v2  ;;  %v3431_v10 = vsub.f32 %v314_v54, %v3417_v0  ;;  %v751_v54 = vsub.f32 %v3395_v50, %v750_v11 }
  0xa8   : > { %619 = vmatpush.msra.mxu3 %v3417_v0 }
  0xa9   : > { %v284_v18 = vpop.permute.xlu0 %283  ;;  %539 = vmatpush.msra.mxu1 %v538_v6  ;;  %587 = vmatpush.msra.mxu2 %v3431_v10  ;;  %v542_v19 = vand.u32 4294901760, %v3431_v10  ;;  %v3097_v6 = vmov 0   ;;  %v752_v62 = vand.u32 4294901760, %v751_v54  ;;  %v780_v54 = vand.u32 4294901760, %v3465_v59 }
  0xaa   : > { %v288_v39 = vsel %vm287_vm8, %v282_v8, %v284_v18  ;;  %v289_v40 = vsel %vm287_vm8, %v284_v18, %v282_v8  ;;  %3076 = vset.pattern.permute.xlu1 %v3097_v6  ;;  %3077 = vset.pattern.permute.xlu0 %v3097_v6  ;;  %v3474_v8 = vsub.f32 %v333_v55, %v3452_v43 }
  0xab   : > { %v296_v48 = vmul.f32 %v292_v5, %v289_v40  ;;  %v543_v49 = vsub.f32 %v3431_v10, %v542_v19  ;;  %v297_v52 = vmul.f32 %v293_v1, %v288_v39  ;;  %v485_v5 = vsub.f32 %v3420_v3, %v3445_v22  ;;  %3078 = vset.pattern.permute.xlu2 %v3097_v6 }
  0xac   : > { %v763_v18 = vsub.f32 %v3370_v30, %v762_v20  ;;  %v758_v40 = vand.u32 4294901760, %v757_v26  ;;  %v775_v55 = vsub.f32 %v3425_v7, %v774_v42  ;;  %v3494_v6 = vsub.f32 %v315_v33, %v3471_v60 }
  0xad   : > { %v3467_v61 = vand.u32 4294901760, %v296_v48  ;;  %v544_v2 = vand.u32 4294901760, %v543_v49  ;;  %v3481_v39 = vand.u32 4294901760, %v297_v52  ;;  %v786_v26 = vand.u32 4294901760, %v3474_v8 }
  0xae   : > { %v764_v29 = vand.u32 4294901760, %v763_v18  ;;  %v776_v33 = vand.u32 4294901760, %v775_v55 }
  0xaf   : > { %481 = vmatpush.msra.mxu0 %v3467_v61  ;;  %545 = vmatpush.msra.mxu1 %v544_v2  ;;  %v547_v1 = vsub.f32 %v296_v48, %v3467_v61  ;;  %v769_v48 = vsub.f32 %v3435_v12, %v768_v56  ;;  %v486_v2 = vand.u32 4294901760, %v485_v5  ;;  %v781_v5 = vsub.f32 %v3465_v59, %v780_v54 }
  0xb0   : > { %621 = vmatpush.msra.mxu3 %v3467_v61  ;;  %v787_v27 = vsub.f32 %v3474_v8, %v786_v26 }
  0xb1   : > { %639 = vmatpush.msrb.mxu0 %v500_v34  ;;  %590 = vmatpush.msra.mxu2 %v547_v1  ;;  %v548_v49 = vand.u32 4294901760, %v547_v1  ;;  %v770_v31 = vand.u32 4294901760, %v769_v48  ;;  %v782_v53 = vand.u32 4294901760, %v781_v5 }
  0xb2   : > { %753 = vmatpush.msrb.mxu3 %v752_v62  ;;  %593 = vmatmul.f32.vlgmr.msra.gmra.mxu2 %v3420_v3  ;;  %v3502_v62 = vsub.f32 %v297_v52, %v3481_v39  ;;  %v792_v52 = vand.u32 4294901760, %v3494_v6  ;;  %v788_v38 = vand.u32 4294901760, %v787_v27 }
  0xb3   : > { %643 = vmatpush.msrb.mxu0 %v506_v37  ;;  %715 = vmatpush.msrb.mxu2 %v3360_v21  ;;  %v549_v34 = vsub.f32 %v547_v1, %v548_v49 }
  0xb4   : > { %759 = vmatpush.msrb.mxu3 %v758_v40  ;;  %487 = vmatmul.f32.vlgmr.msra.gmra.mxu0 %v486_v2 }
  0xb5   : > { %647 = vmatpush.msrb.mxu0 %v512_v35  ;;  %717 = vmatpush.msrb.mxu2 %v3372_v32  ;;  %v550_v37 = vand.u32 4294901760, %v549_v34  ;;  %v798_v35 = vand.u32 4294901760, %v3502_v62 }
  0xb6   : > { %765 = vmatpush.msrb.mxu3 %v764_v29 }
  0xb7   : > { %651 = vmatpush.msrb.mxu0 %v518_v63  ;;  %719 = vmatpush.msrb.mxu2 %v3339_v9  ;;  %v793_v63 = vsub.f32 %v3494_v6, %v792_v52 }
  0xb8   : > { %771 = vmatpush.msrb.mxu3 %v770_v31  ;;  %551 = vmatpush.msra.mxu1 %v550_v37 }
  0xb9   : > { %655 = vmatpush.msrb.mxu0 %v524_v51  ;;  %721 = vmatpush.msrb.mxu2 %v3408_v58 }
  0xba   : > { %685 = vmatpush.msrb.mxu1 %v3238_v25  ;;  %777 = vmatpush.msrb.mxu3 %v776_v33  ;;  %v799_v25 = vsub.f32 %v3502_v62, %v798_v35 }
  0xbb   : > { %659 = vmatpush.msrb.mxu0 %v530_v45  ;;  %723 = vmatpush.msrb.mxu2 %v3392_v44 }
  0xbc   : > { %687 = vmatpush.msrb.mxu1 %v3236_v24  ;;  %783 = vmatpush.msrb.mxu3 %v782_v53  ;;  %v794_v24 = vand.u32 4294901760, %v793_v63 }
  0xbd   : > { %663 = vmatpush.msrb.mxu0 %v536_v41  ;;  %725 = vmatpush.msrb.mxu2 %v3439_v14 }
  0xbe   : > { %689 = vmatpush.msrb.mxu1 %v3223_v16  ;;  %789 = vmatpush.msrb.mxu3 %v788_v38  ;;  %v800_v16 = vand.u32 4294901760, %v799_v25 }
  0xbf   : > { %625 = vmatmul.f32.vlgmr.msra.gmra.mxu3 %v3445_v22  ;;  %667 = vmatpush.msrb.mxu0 %v542_v19 }
  0xc0   : > { %691 = vmatpush.msrb.mxu1 %v3295_v46  ;;  %727 = vmatpush.msrb.mxu2 %v3452_v43 }
  0xc1   : > { %795 = vmatpush.msrb.mxu3 %v794_v24  ;;  %671 = vmatpush.msrb.mxu0 %v548_v49 }
  0xc2   : > { %693 = vmatpush.msrb.mxu1 %v3246_v28  ;;  %729 = vmatpush.msrb.mxu2 %v3471_v60  ;;  %v447_v28 = vld [vmem:[%s4882_s2] sm:$0xff] }
  0xc3   : > { %801 = vmatpush.msrb.mxu3 %v800_v16  ;;  %553 = vmatmul.f32.vlgmr.msra.gmra.mxu1 %v3382_v47 }
  0xc4   : > { %816 = vmatpush.msra.mxu0 %v3395_v50  ;;  %695 = vmatpush.msrb.mxu1 %v3355_v15 }
  0xc5   : > { %935 = vmatpush.msra.mxu3 %v3360_v21  ;;  %731 = vmatpush.msrb.mxu2 %v3481_v39 }
  0xc6   : > { %737 = vmatmul.f32.vlgmr.msrb.gmra.mxu2 %v486_v2  ;;  %819 = vmatpush.msra.mxu0 %v3406_v57  ;;  %v3036_v2 = vld [vmem:[%s4886_s6 + $0x10] sm:$0x3] }
  0xc7   : > { %889 = vmatpush.msra.mxu2 %v750_v11  ;;  %937 = vmatpush.msra.mxu3 %v3372_v32  ;;  %v1081_v31 = vperm.slane %v3036_v2, 0  ;;  %v1082_v38 = vperm.slane %v3036_v2, 1 }
  0xc8   : > { %697 = vmatpush.msrb.mxu1 %v3357_v17  ;;  %803 = vmatmul.f32.vlgmr.msrb.gmra.mxu3 %v3382_v47 }
  0xc9   : > { %822 = vmatpush.msra.mxu0 %v3370_v30  ;;  %893 = vmatpush.msra.mxu2 %v756_v13 }
  0xca   : > { %939 = vmatpush.msra.mxu3 %v3339_v9  ;;  %699 = vmatpush.msrb.mxu1 %v3417_v0 }
  0xcb   : > { %673 = vmatmul.f32.vlgmr.msrb.gmra.mxu0 %v3382_v47  ;;  %897 = vmatpush.msra.mxu2 %v762_v20 }
  0xcc   : > { %825 = vmatpush.msra.mxu0 %v3435_v12  ;;  %941 = vmatpush.msra.mxu3 %v3408_v58 }
  0xcd   : > { %701 = vmatpush.msrb.mxu1 %v3467_v61  ;;  %901 = vmatpush.msra.mxu2 %v768_v56  ;;  %v3035_v61 = vld [vmem:[%s4886_s6 + $0xe] sm:$0x3] }
  0xce   : > { %703 = vmatmul.f32.vlgmr.msrb.gmra.mxu1 %v3382_v47  ;;  %828 = vmatpush.msra.mxu0 %v3425_v7  ;;  %v1065_v1 = vperm.slane %v3035_v61, 0  ;;  %v1066_v18 = vperm.slane %v3035_v61, 1 }
  0xcf   : > { %855 = vmatpush.msra.mxu1 %v3360_v21  ;;  %943 = vmatpush.msra.mxu3 %v3392_v44 }
  0xd0   : > { %450 = vperm.xlu1 %3076, %v447_v28   ;;  %831 = vmatpush.msra.mxu0 %v3465_v59 }
  0xd1   : > { %857 = vmatpush.msra.mxu1 %v3372_v32  ;;  %905 = vmatpush.msra.mxu2 %v774_v42 }
  0xd2   : > { %945 = vmatpush.msra.mxu3 %v3439_v14  ;;  %834 = vmatpush.msra.mxu0 %v3474_v8 }
  0xd3   : > { %859 = vmatpush.msra.mxu1 %v3339_v9  ;;  %909 = vmatpush.msra.mxu2 %v780_v54 }
  0xd4   : > { %947 = vmatpush.msra.mxu3 %v3452_v43  ;;  %837 = vmatpush.msra.mxu0 %v3494_v6  ;;  %v3034_v6 = vld [vmem:[%s4886_s6 + $0xc] sm:$0x3] }
  0xd5   : > { %861 = vmatpush.msra.mxu1 %v3408_v58  ;;  %913 = vmatpush.msra.mxu2 %v786_v26  ;;  %v3032_v26 = vld [vmem:[%s4886_s6 + $0x6] sm:$0x3]  ;;  %v1049_v37 = vperm.slane %v3034_v6, 0 }
  0xd6   : > { %949 = vmatpush.msra.mxu3 %v3471_v60  ;;  %840 = vmatpush.msra.mxu0 %v3502_v62 }
  0xd7   : > { %863 = vmatpush.msra.mxu1 %v3392_v44  ;;  %917 = vmatpush.msra.mxu2 %v792_v52  ;;  %v1015_v52 = vperm.slane %v3032_v26, 0 }
  0xd8   : > { %951 = vmatpush.msra.mxu3 %v3481_v39  ;;  %843 = vmatmul.f32.vlgmr.msra.gmra.mxu0 %v3420_v3 }
  0xd9   : > { %865 = vmatpush.msra.mxu1 %v3439_v14  ;;  %921 = vmatpush.msra.mxu2 %v798_v35 }
  0xda   : > { %923 = vmatmul.f32.vlgmr.msra.gmra.mxu2 %v3382_v47  ;;  %953 = vmatmul.f32.vlgmr.msra.gmra.mxu3 %v3382_v47 }
  0xdb   : > { %867 = vmatpush.msra.mxu1 %v3452_v43 }
  0xdd   : > { %869 = vmatpush.msra.mxu1 %v3471_v60 }
  0xdf   : > { %871 = vmatpush.msra.mxu1 %v3481_v39 }
  0xe0   : > { %875 = vmatmul.f32.vlgmr.msra.gmra.mxu1 %v3445_v22 }
 0x131   : > { %v488_v46 = vpop.f32.mrf.mxu0 }
 0x135   : > { %v594_v21 = vpop.f32.mrf.mxu2 }
 0x140   : > { %v554_v51 = vpop.f32.mrf.mxu1 }
 0x142   : > { %v451_v9 = vpop.permute.xlu1 %450  ;;  %v626_v30 = vpop.f32.mrf.mxu3 }
 0x143   : > { %v489_v15 = vadd.f32 %v488_v46, %v451_v9 }
 0x145   : > { %v555_v17 = vadd.f32 %v554_v51, %v489_v15  ;;  %v3033_v51 = vld [vmem:[%s4886_s6 + $0xa] sm:$0x3] }
 0x147   : > { %v595_v23 = vadd.f32 %v594_v21, %v555_v17 }
 0x148   : > { %v674_v32 = vpop.f32.mrf.mxu0 }
 0x149   : > { %v627_v36 = vadd.f32 %v626_v30, %v595_v23  ;;  %v738_v50 = vpop.f32.mrf.mxu2 }
 0x14a   : > { %v739_v57 = vadd.f32 %v738_v50, %v451_v9  ;;  %v3681_v9 = vld [vmem:[%s4886_s6 + $0x4] sm:$0x3]  ;;  %v1033_v50 = vperm.slane %v3033_v51, 0 }
 0x14b   : > { %v675_v45 = vadd.f32 %v674_v32, %v627_v36  ;;  %v704_v47 = vpop.f32.mrf.mxu1  ;;  %v804_v58 = vpop.f32.mrf.mxu3  ;;  %v1016_v36 = vperm.slane %v3032_v26, 1  ;;  %v1000_v26 = vperm.slane %v3681_v9, 1 }
 0x14c   : > { %v805_v3 = vadd.f32 %v804_v58, %v739_v57  ;;  %v1034_v57 = vperm.slane %v3033_v51, 1  ;;  %v999_v58 = vperm.slane %v3681_v9, 0 }
 0x14d   : > { %v705_v41 = vadd.f32 %v704_v47, %v675_v45  ;;  %v1050_v47 = vperm.slane %v3034_v6, 1 }
 0x14f   : > { %v957_v44 = vmax.f32 %v705_v41, 0.0 }
 0x151   : > { %1041 = vrot.lane.b32.xlu0 %v957_v44, %s3091_s9  ;;  %1057 = vrot.lane.b32.xlu1 %v957_v44, %s3089_s30  ;;  %v3637_v8 = vand.u32 4294901760, %v957_v44 }
 0x152   : > { %1073 = vrot.lane.b32.xlu2 %v957_v44, %s3090_s8 }
 0x153   : > { %v3644_v48 = vsub.f32 %v957_v44, %v3637_v8 }
 0x155   : > { %v844_v0 = vpop.f32.mrf.mxu0  ;;  %v1184_v34 = vand.u32 4294901760, %v3644_v48 }
 0x156   : > { %v845_v7 = vadd.f32 %v844_v0, %v805_v3 }
 0x157   : > { %v3665_v53 = vsub.f32 %v3644_v48, %v1184_v34 }
 0x159   : > { %991 = vrot.lane.b32.xlu0 %v957_v44, %s3094_s12  ;;  %1007 = vrot.lane.b32.xlu1 %v957_v44, %s3093_s11  ;;  %v1186_v41 = vand.u32 4294901760, %v3665_v53 }
 0x15a   : > { %1025 = vrot.lane.b32.xlu2 %v957_v44, %s3092_s10 }
 0x15d   : > { %v876_v10 = vpop.f32.mrf.mxu1  ;;  %v924_v11 = vpop.f32.mrf.mxu2 }
 0x15e   : > { %v877_v12 = vadd.f32 %v876_v10, %v845_v7  ;;  %v954_v13 = vpop.f32.mrf.mxu3 }
 0x160   : > { %v925_v14 = vadd.f32 %v924_v11, %v877_v12 }
 0x162   : > { %v955_v19 = vadd.f32 %v954_v13, %v925_v14  ;;  %975 = vrot.lane.b32.xlu2 %v957_v44, %s3095_s13 }
 0x164   : > { %v3611_v20 = vmax.f32 %v955_v19, 0.0 }
 0x166   : > { %1075 = vrot.lane.b32.xlu0 %v3611_v20, %s3090_s8  ;;  %1043 = vrot.lane.b32.xlu1 %v3611_v20, %s3091_s9  ;;  %v3687_v17 = vand.u32 4294901760, %v3611_v20 }
 0x16a   : > { %1059 = vrot.lane.b32.xlu2 %v3611_v20, %s3089_s30 }
 0x16e   : > { %1027 = vrot.lane.b32.xlu0 %v3611_v20, %s3092_s10  ;;  %993 = vrot.lane.b32.xlu1 %v3611_v20, %s3094_s12 }
 0x172   : > { %1009 = vrot.lane.b32.xlu2 %v3611_v20, %s3093_s11 }
 0x176   : > { %977 = vrot.lane.b32.xlu0 %v3611_v20, %s3095_s13  ;;  %959 = vrot.lane.b32.xlu1 %v957_v44, %s3096_s14 }
 0x17a   : > { %961 = vrot.lane.b32.xlu2 %v3611_v20, %s3096_s14 }
 0x1ac   : > { %v1074_v22 = vpop.permute.xlu2 %1073 }
 0x1b4   : > { %v3630_v42 = vpop.permute.xlu2 %1025 }
 0x1bc   : > { %v3632_v43 = vpop.permute.xlu2 %975 }
 0x1c3   : > { %v1042_v56 = vpop.permute.xlu0 %1041  ;;  %v1058_v59 = vpop.permute.xlu1 %1057 }
 0x1c4   : > { %v1060_v60 = vpop.permute.xlu2 %1059 }
 0x1c5   : > { %v1061_v39 = vsel %vm396_vm1, %v1058_v59, %v1060_v60  ;;  %v1062_v49 = vsel %vm396_vm1, %v1060_v60, %v1058_v59 }
 0x1c6   : > { %v1069_v54 = vmul.f32 %v1065_v1, %v1061_v39  ;;  %v1070_v29 = vmul.f32 %v1066_v18, %v1062_v49 }
 0x1c8   : > { %v3658_v33 = vand.u32 4294901760, %v1069_v54  ;;  %v3660_v5 = vand.u32 4294901760, %v1070_v29 }
 0x1ca   : > { %v3684_v15 = vsub.f32 %v1069_v54, %v3658_v33  ;;  %v3690_v21 = vsub.f32 %v1070_v29, %v3660_v5  ;;  %v3747_v54 = vld [vmem:[%s4886_s6] sm:$0x3] }
 0x1cb   : > { %v3641_v40 = vpop.permute.xlu0 %991  ;;  %v1008_v55 = vpop.permute.xlu1 %1007 }
 0x1cc   : > { %v1010_v62 = vpop.permute.xlu2 %1009  ;;  %v1166_v10 = vand.u32 4294901760, %v3684_v15  ;;  %v1416_v19 = vand.u32 4294901760, %v3690_v21 }
 0x1cd   : > { %v1012_v63 = vsel %vm340_vm4, %v1010_v62, %v1008_v55  ;;  %v1011_v0 = vsel %vm340_vm4, %v1008_v55, %v1010_v62  ;;  %v3030_v55 = vld [vmem:[%s4886_s6 + $0x2] sm:$0x3] }
 0x1ce   : > { %v1019_v23 = vmul.f32 %v1015_v52, %v1012_v63  ;;  %v3733_v1 = vmul.f32 %v1016_v36, %v1011_v0  ;;  %v1167_v2 = vsub.f32 %v3684_v15, %v1166_v10  ;;  %v3784_v9 = vsub.f32 %v3690_v21, %v1416_v19 }
 0x1d0   : > { %v3711_v11 = vand.u32 4294901760, %v1019_v23  ;;  %v1168_v51 = vand.u32 4294901760, %v1167_v2 }
 0x1d8   : > { %v1076_v27 = vpop.permute.xlu0 %1075  ;;  %v1044_v35 = vpop.permute.xlu1 %1043 }
 0x1d9   : > { %v1077_v25 = vsel %vm414_vm2, %v1074_v22, %v1076_v27  ;;  %v1045_v24 = vsel %vm378_vm0, %v1042_v56, %v1044_v35  ;;  %v1078_v16 = vsel %vm414_vm2, %v1076_v27, %v1074_v22  ;;  %v1046_v3 = vsel %vm378_vm0, %v1044_v35, %v1042_v56 }
 0x1da   : > { %v1085_v28 = vmul.f32 %v1081_v31, %v1077_v25  ;;  %v1053_v46 = vmul.f32 %v1049_v37, %v1045_v24  ;;  %v1086_v45 = vmul.f32 %v1082_v38, %v1078_v16  ;;  %v3719_v22 = vsub.f32 %v3611_v20, %v3687_v17 }
 0x1db   : > { %v1054_v20 = vmul.f32 %v1050_v47, %v1046_v3  ;;  %v3759_v31 = vsub.f32 %v1019_v23, %v3711_v11  ;;  %v983_v27 = vperm.slane %v3030_v55, 0  ;;  %v984_v38 = vperm.slane %v3030_v55, 1 }
 0x1dc   : > { %v3692_v30 = vand.u32 4294901760, %v1085_v28  ;;  %v3694_v32 = vand.u32 4294901760, %v1053_v46  ;;  %v3721_v56 = vand.u32 4294901760, %v1086_v45  ;;  %v967_v25 = vperm.slane %v3747_v54, 0 }
 0x1dd   : > { %v3768_v63 = vand.u32 4294901760, %v1054_v20  ;;  %v3777_v16 = vand.u32 4294901760, %v3733_v1  ;;  %v968_v55 = vperm.slane %v3747_v54, 1 }
 0x1de   : > { %v3698_v44 = vsub.f32 %v1085_v28, %v3692_v30  ;;  %1125 = vmatpush.msrb.mxu0 %v3692_v30  ;;  %1265 = vmatpush.msrb.mxu3 %v3692_v30  ;;  %v3708_v7 = vsub.f32 %v1053_v46, %v3694_v32  ;;  %v3762_v37 = vsub.f32 %v1086_v45, %v3721_v56  ;;  %v962_v28 = vpop.permute.xlu2 %961 }
 0x1e0   : > { %v1160_v12 = vand.u32 4294901760, %v3698_v44  ;;  %v1028_v13 = vpop.permute.xlu0 %1027  ;;  %v994_v14 = vpop.permute.xlu1 %993  ;;  %1127 = vmatpush.msrb.mxu0 %v3658_v33  ;;  %1226 = vmatpush.msrb.mxu2 %v3698_v44  ;;  %v1172_v6 = vand.u32 4294901760, %v3708_v7 }
 0x1e1   : > { %v1029_v59 = vsel %vm360_vm3, %v3630_v42, %v1028_v13  ;;  %v1030_v61 = vsel %vm360_vm3, %v1028_v13, %v3630_v42  ;;  %v996_v60 = vsel %vm322_vm5, %v994_v14, %v3641_v40  ;;  %1267 = vmatpush.msrb.mxu3 %v3658_v33  ;;  %v995_v23 = vsel %vm322_vm5, %v3641_v40, %v994_v14  ;;  %v1089_v13 = vld [vmem:[%s4883_s3] sm:$0xff] }
 0x1e2   : > { %v1037_v18 = vmul.f32 %v1033_v50, %v1029_v59  ;;  %v1003_v39 = vmul.f32 %v999_v58, %v996_v60  ;;  %1129 = vmatpush.msrb.mxu0 %v3694_v32  ;;  %v1038_v49 = vmul.f32 %v1034_v57, %v1030_v61  ;;  %1229 = vmatpush.msrb.mxu2 %v3684_v15  ;;  %v1190_v57 = vand.u32 4294901760, %v3759_v31 }
 0x1e3   : > { %1269 = vmatpush.msrb.mxu3 %v3694_v32  ;;  %v1161_v42 = vsub.f32 %v3698_v44, %v1160_v12  ;;  %v1173_v35 = vsub.f32 %v3708_v7, %v1172_v6  ;;  %v1410_v58 = vand.u32 4294901760, %v3762_v37  ;;  %v3806_v14 = vsub.f32 %v1054_v20, %v3768_v63 }
 0x1e4   : > { %v3753_v29 = vand.u32 4294901760, %v1037_v18  ;;  %v3756_v62 = vand.u32 4294901760, %v1003_v39  ;;  %1232 = vmatpush.msrb.mxu2 %v3708_v7  ;;  %v3779_v46 = vand.u32 4294901760, %v1038_v49  ;;  %v1115_v2 = vsel %vm453_vm6, %v1089_v13, 0 }
 0x1e5   : > { %v1162_v52 = vand.u32 4294901760, %v1161_v42  ;;  %v1174_v3 = vand.u32 4294901760, %v1173_v35  ;;  %v3836_v35 = vsub.f32 %v3733_v1, %v3777_v16 }
 0x1e6   : > { %1131 = vmatpush.msrb.mxu0 %v3753_v29  ;;  %1271 = vmatpush.msrb.mxu3 %v3753_v29  ;;  %v3774_v24 = vsub.f32 %v1037_v18, %v3753_v29  ;;  %v3793_v50 = vsub.f32 %v1003_v39, %v3756_v62  ;;  %v3813_v18 = vsub.f32 %v1038_v49, %v3779_v46 }
 0x1e7   : > { %1163 = vmatpush.msrb.mxu1 %v1162_v52  ;;  %v1004_v39 = vmul.f32 %v1000_v26, %v995_v23 }
 0x1e8   : > { %v978_v36 = vpop.permute.xlu0 %977  ;;  %v960_v45 = vpop.permute.xlu1 %959  ;;  %1133 = vmatpush.msrb.mxu0 %v3637_v8  ;;  %1235 = vmatpush.msrb.mxu2 %v3774_v24  ;;  %v1178_v47 = vand.u32 4294901760, %v3774_v24  ;;  %v1196_v49 = vand.u32 4294901760, %v3793_v50  ;;  %v1428_v23 = vand.u32 4294901760, %v3813_v18 }
 0x1e9   : > { %v980_v0 = vsel %vm304_vm7, %v978_v36, %v3632_v43  ;;  %v964_v40 = vsel %vm287_vm8, %v962_v28, %v960_v45  ;;  %1169 = vmatpush.msrb.mxu1 %v1168_v51  ;;  %v979_v59 = vsel %vm304_vm7, %v3632_v43, %v978_v36  ;;  %1273 = vmatpush.msrb.mxu3 %v3637_v8  ;;  %v3847_v51 = vand.u32 4294901760, %v1004_v39 }
 0x1ea   : > { %v987_v61 = vmul.f32 %v983_v27, %v980_v0  ;;  %v971_v60 = vmul.f32 %v967_v25, %v964_v40  ;;  %1135 = vmatpush.msrb.mxu0 %v3711_v11  ;;  %v1179_v20 = vsub.f32 %v3774_v24, %v1178_v47  ;;  %1238 = vmatpush.msrb.mxu2 %v3644_v48  ;;  %v3854_v36 = vand.u32 4294901760, %v1115_v2 }
 0x1eb   : > { %1175 = vmatpush.msrb.mxu1 %v1174_v3  ;;  %1275 = vmatpush.msrb.mxu3 %v3711_v11  ;;  %v988_v54 = vmul.f32 %v984_v38, %v979_v59  ;;  %v963_v26 = vsel %vm287_vm8, %v960_v45, %v962_v28  ;;  %v1411_v27 = vsub.f32 %v3762_v37, %v1410_v58  ;;  %v1422_v28 = vand.u32 4294901760, %v3806_v14 }
 0x1ec   : > { %v3820_v42 = vand.u32 4294901760, %v987_v61  ;;  %v3822_v43 = vand.u32 4294901760, %v971_v60  ;;  %1137 = vmatpush.msrb.mxu0 %v3756_v62  ;;  %v1180_v52 = vand.u32 4294901760, %v1179_v20  ;;  %1241 = vmatpush.msrb.mxu2 %v3759_v31  ;;  %v1191_v25 = vsub.f32 %v3759_v31, %v1190_v57 }
 0x1ed   : > { %1277 = vmatpush.msrb.mxu3 %v3756_v62  ;;  %v972_v45 = vmul.f32 %v968_v55, %v963_v26  ;;  %v1197_v0 = vsub.f32 %v3793_v50, %v1196_v49  ;;  %v3862_v3 = vand.u32 4294901760, %v988_v54  ;;  %v1412_v13 = vand.u32 4294901760, %v1411_v27 }
 0x1ee   : > { %v3841_v38 = vsub.f32 %v987_v61, %v3820_v42  ;;  %1139 = vmatpush.msrb.mxu0 %v3820_v42  ;;  %1181 = vmatpush.msrb.mxu1 %v1180_v52  ;;  %v3851_v1 = vsub.f32 %v971_v60, %v3822_v43  ;;  %v1434_v61 = vand.u32 4294901760, %v3719_v22  ;;  %v1192_v60 = vand.u32 4294901760, %v1191_v25 }
 0x1ef   : > { %1244 = vmatpush.msrb.mxu2 %v3793_v50  ;;  %1279 = vmatpush.msrb.mxu3 %v3820_v42  ;;  %v1418_v55 = vand.u32 4294901760, %v3784_v9  ;;  %v1423_v20 = vsub.f32 %v3806_v14, %v1422_v28  ;;  %v1429_v26 = vsub.f32 %v3813_v18, %v1428_v23  ;;  %v1440_v9 = vand.u32 4294901760, %v3836_v35  ;;  %v3079_v50 = vld [vmem:[%s3154_s29] sm:$0xff] }
 0x1f0   : > { %v1202_v40 = vand.u32 4294901760, %v3841_v38  ;;  %1141 = vmatpush.msrb.mxu0 %v3822_v43  ;;  %1187 = vmatpush.msrb.mxu1 %v1186_v41  ;;  %v1208_v59 = vand.u32 4294901760, %v3851_v1  ;;  %v3879_v41 = vsub.f32 %v1004_v39, %v3847_v51  ;;  %v3888_v52 = vsub.f32 %v1115_v2, %v3854_v36 }
 0x1f1   : > { %1247 = vmatpush.msrb.mxu2 %v3841_v38  ;;  %1281 = vmatpush.msrb.mxu3 %v3822_v43  ;;  %v3890_v27 = vand.u32 4294901760, %v972_v45  ;;  %v1198_v39 = vand.u32 4294901760, %v1197_v0  ;;  %v1424_v2 = vand.u32 4294901760, %v1423_v20  ;;  %v1435_v0 = vsub.f32 %v3719_v22, %v1434_v61 }
 0x1f2   : > { %v1203_v53 = vsub.f32 %v3841_v38, %v1202_v40  ;;  %1299 = vmatpush.msra.mxu0 %v1160_v12  ;;  %1193 = vmatpush.msrb.mxu1 %v1192_v60  ;;  %v1209_v44 = vsub.f32 %v3851_v1, %v1208_v59  ;;  %v3897_v12 = vsub.f32 %v988_v54, %v3862_v3  ;;  %v1446_v15 = vand.u32 4294901760, %v3879_v41 }
 0x1f3   : > { %1413 = vmatpush.msra.mxu3 %v1412_v13  ;;  %1250 = vmatpush.msrb.mxu2 %v3851_v1  ;;  %v1441_v54 = vsub.f32 %v3836_v35, %v1440_v9  ;;  %v1430_v13 = vand.u32 4294901760, %v1429_v26  ;;  %v3043_v26 = vld [vmem:[%s4886_s6 + $0x10] sm:$0x3] }
 0x1f4   : > { %v1204_v25 = vand.u32 4294901760, %v1203_v53  ;;  %1303 = vmatpush.msra.mxu0 %v1166_v10  ;;  %1199 = vmatpush.msrb.mxu1 %v1198_v39  ;;  %v3913_v10 = vsub.f32 %v972_v45, %v3890_v27  ;;  %v1210_v60 = vand.u32 4294901760, %v1209_v44  ;;  %v1452_v7 = vand.u32 4294901760, %v3897_v12 }
 0x1f5   : > { %1375 = vmatpush.msra.mxu2 %v3721_v56  ;;  %1419 = vmatpush.msra.mxu3 %v1418_v55  ;;  %v3916_v55 = vand.u32 4294901760, %v3888_v52  ;;  %v1447_v45 = vsub.f32 %v3879_v41, %v1446_v15  ;;  %v1442_v24 = vand.u32 4294901760, %v1441_v54 }
 0x1f6   : > { %1307 = vmatpush.msra.mxu0 %v1172_v6  ;;  %1205 = vmatpush.msrb.mxu1 %v1204_v25  ;;  %v1436_v6 = vand.u32 4294901760, %v1435_v0  ;;  %v1458_v20 = vand.u32 4294901760, %v3913_v10  ;;  %v1453_v48 = vsub.f32 %v3897_v12, %v1452_v7 }
 0x1f7   : > { %1377 = vmatpush.msra.mxu2 %v3660_v5  ;;  %1425 = vmatpush.msra.mxu3 %v1424_v2 }
 0x1f8   : > { %1311 = vmatpush.msra.mxu0 %v1178_v47  ;;  %1211 = vmatpush.msrb.mxu1 %v1210_v60  ;;  %v1145_v47 = vsub.f32 %v3888_v52, %v3916_v55  ;;  %v1454_v31 = vand.u32 4294901760, %v1453_v48  ;;  %v4104_v48 = vld [vmem:[%s4886_s6 + $0x6] sm:$0x3] }
 0x1f9   : > { %1379 = vmatpush.msra.mxu2 %v3768_v63  ;;  %1431 = vmatpush.msra.mxu3 %v1430_v13 }
 0x1fa   : > { %1315 = vmatpush.msra.mxu0 %v1184_v34  ;;  %1345 = vmatpush.msra.mxu1 %v3692_v30  ;;  %v1448_v34 = vand.u32 4294901760, %v1447_v45  ;;  %v1146_v30 = vand.u32 4294901760, %v1145_v47 }
 0x1fb   : > { %1381 = vmatpush.msra.mxu2 %v3779_v46  ;;  %1437 = vmatpush.msra.mxu3 %v1436_v6 }
 0x1fc   : > { %1319 = vmatpush.msra.mxu0 %v1190_v57  ;;  %1347 = vmatpush.msra.mxu1 %v3658_v33  ;;  %v1459_v33 = vsub.f32 %v3913_v10, %v1458_v20 }
 0x1fd   : > { %1383 = vmatpush.msra.mxu2 %v3687_v17  ;;  %1443 = vmatpush.msra.mxu3 %v1442_v24 }
 0x1fe   : > { %1253 = vmatmul.f32.vlgmr.msrb.gmra.mxu2 %v3888_v52  ;;  %1323 = vmatpush.msra.mxu0 %v1196_v49 }
 0x1ff   : > { %1349 = vmatpush.msra.mxu1 %v3694_v32  ;;  %1385 = vmatpush.msra.mxu2 %v3777_v16  ;;  %v1460_v32 = vand.u32 4294901760, %v1459_v33 }
 0x200   : > { %1449 = vmatpush.msra.mxu3 %v1448_v34  ;;  %1327 = vmatpush.msra.mxu0 %v1202_v40  ;;  %v3080_v40 = vld [vmem:[%s3154_s29 + $0x8] sm:$0xff] }
 0x201   : > { %1285 = vmatmul.f32.vlgmr.msrb.gmra.mxu3 %v3916_v55  ;;  %1351 = vmatpush.msra.mxu1 %v3753_v29  ;;  %v4109_v34 = vld [vmem:[%s4886_s6 + $0xa] sm:$0x3] }
 0x202   : > { %1387 = vmatpush.msra.mxu2 %v3847_v51  ;;  %1455 = vmatpush.msra.mxu3 %v1454_v31 }
 0x203   : > { %1147 = vmatmul.f32.vlgmr.msrb.gmra.mxu0 %v1146_v30  ;;  %1353 = vmatpush.msra.mxu1 %v3637_v8  ;;  %v1108_v8 = vld [vmem:[%s4884_s4] sm:$0xff] }
 0x204   : > { %1331 = vmatpush.msra.mxu0 %v1208_v59  ;;  %1389 = vmatpush.msra.mxu2 %v3862_v3 }
 0x205   : > { %1461 = vmatpush.msra.mxu3 %v1460_v32  ;;  %1213 = vmatmul.f32.vlgmr.msrb.gmra.mxu1 %v3854_v36  ;;  %v3044_v32 = vld [vmem:[%s4881_s1 + $0x8] sm:$0xff] }
 0x206   : > { %1476 = vmatpush.msrb.mxu0 %v3762_v37  ;;  %1355 = vmatpush.msra.mxu1 %v3711_v11 }
 0x207   : > { %1595 = vmatpush.msrb.mxu3 %v3721_v56  ;;  %1391 = vmatpush.msra.mxu2 %v3890_v27 }
 0x208   : > { %1397 = vmatmul.f32.vlgmr.msra.gmra.mxu2 %v1146_v30  ;;  %1479 = vmatpush.msrb.mxu0 %v3690_v21 }
 0x209   : > { %1549 = vmatpush.msrb.mxu2 %v1410_v58  ;;  %1597 = vmatpush.msrb.mxu3 %v3660_v5 }
 0x20a   : > { %1357 = vmatpush.msra.mxu1 %v3756_v62  ;;  %1463 = vmatmul.f32.vlgmr.msra.gmra.mxu3 %v3854_v36 }
 0x20b   : > { %1482 = vmatpush.msrb.mxu0 %v3806_v14  ;;  %1553 = vmatpush.msrb.mxu2 %v1416_v19 }
 0x20c   : > { %1599 = vmatpush.msrb.mxu3 %v3768_v63  ;;  %1359 = vmatpush.msra.mxu1 %v3820_v42 }
 0x20d   : > { %1333 = vmatmul.f32.vlgmr.msra.gmra.mxu0 %v3854_v36  ;;  %1557 = vmatpush.msrb.mxu2 %v1422_v28 }
 0x20e   : > { %1485 = vmatpush.msrb.mxu0 %v3813_v18  ;;  %1601 = vmatpush.msrb.mxu3 %v3779_v46 }
 0x20f   : > { %1361 = vmatpush.msra.mxu1 %v3822_v43  ;;  %1561 = vmatpush.msrb.mxu2 %v1428_v23 }
 0x210   : > { %1363 = vmatmul.f32.vlgmr.msra.gmra.mxu1 %v3854_v36  ;;  %1488 = vmatpush.msrb.mxu0 %v3719_v22 }
 0x211   : > { %1515 = vmatpush.msrb.mxu1 %v3721_v56  ;;  %1603 = vmatpush.msrb.mxu3 %v3687_v17 }
 0x212   : > { %1111 = vperm.xlu0 %3077, %v1108_v8   ;;  %1491 = vmatpush.msrb.mxu0 %v3836_v35 }
 0x213   : > { %1517 = vmatpush.msrb.mxu1 %v3660_v5  ;;  %1565 = vmatpush.msrb.mxu2 %v1434_v61  ;;  %v3045_v61 = vld [vmem:[%s4882_s2 + $0x8] sm:$0xff] }
 0x214   : > { %1605 = vmatpush.msrb.mxu3 %v3777_v16  ;;  %1494 = vmatpush.msrb.mxu0 %v3879_v41 }
 0x215   : > { %1519 = vmatpush.msrb.mxu1 %v3768_v63  ;;  %1569 = vmatpush.msrb.mxu2 %v1440_v9 }
 0x216   : > { %1607 = vmatpush.msrb.mxu3 %v3847_v51  ;;  %1497 = vmatpush.msrb.mxu0 %v3897_v12  ;;  %v4072_v12 = vld [vmem:[%s4886_s6 + $0xe] sm:$0x3] }
 0x217   : > { %1521 = vmatpush.msrb.mxu1 %v3779_v46  ;;  %1573 = vmatpush.msrb.mxu2 %v1446_v15  ;;  %v1727_v54 = vperm.slane %v4072_v12, 0 }
 0x218   : > { %1609 = vmatpush.msrb.mxu3 %v3862_v3  ;;  %1500 = vmatpush.msrb.mxu0 %v3913_v10 }
 0x219   : > { %1523 = vmatpush.msrb.mxu1 %v3687_v17  ;;  %1577 = vmatpush.msrb.mxu2 %v1452_v7 }
 0x21a   : > { %1611 = vmatpush.msrb.mxu3 %v3890_v27  ;;  %1503 = vmatmul.f32.vlgmr.msrb.gmra.mxu0 %v3888_v52  ;;  %v1743_v52 = vperm.slane %v3043_v26, 0 }
 0x21b   : > { %1525 = vmatpush.msrb.mxu1 %v3777_v16  ;;  %1581 = vmatpush.msrb.mxu2 %v1458_v20 }
 0x21c   : > { %1583 = vmatmul.f32.vlgmr.msrb.gmra.mxu2 %v3854_v36  ;;  %1613 = vmatmul.f32.vlgmr.msrb.gmra.mxu3 %v3854_v36 }
 0x21d   : > { %1527 = vmatpush.msrb.mxu1 %v3847_v51 }
 0x21f   : > { %1529 = vmatpush.msrb.mxu1 %v3862_v3 }
 0x221   : > { %1531 = vmatpush.msrb.mxu1 %v3890_v27 }
 0x222   : > { %1535 = vmatmul.f32.vlgmr.msrb.gmra.mxu1 %v3916_v55 }
 0x280   : > { %v1148_v5 = vpop.f32.mrf.mxu0 }
 0x281   : > { %v1254_v22 = vpop.f32.mrf.mxu2 }
 0x282   : > { %v1214_v17 = vpop.f32.mrf.mxu1 }
 0x284   : > { %v1112_v21 = vpop.permute.xlu0 %1111  ;;  %v1286_v29 = vpop.f32.mrf.mxu3 }
 0x285   : > { %v1149_v11 = vadd.f32 %v1148_v5, %v1112_v21  ;;  %v1677_v5 = vperm.slane %v4104_v48, 0 }
 0x287   : > { %v1215_v19 = vadd.f32 %v1214_v17, %v1149_v11  ;;  %v1695_v17 = vperm.slane %v4109_v34, 0 }
 0x289   : > { %v1255_v56 = vadd.f32 %v1254_v22, %v1215_v19  ;;  %v3041_v19 = vld [vmem:[%s4886_s6 + $0xc] sm:$0x3]  ;;  %v1744_v22 = vperm.slane %v3043_v26, 1 }
 0x28a   : > { %v1334_v62 = vpop.f32.mrf.mxu0 }
 0x28b   : > { %v1287_v37 = vadd.f32 %v1286_v29, %v1255_v56  ;;  %v1398_v14 = vpop.f32.mrf.mxu2 }
 0x28c   : > { %v1399_v18 = vadd.f32 %v1398_v14, %v1112_v21  ;;  %v4146_v14 = vld [vmem:[%s4886_s6 + $0x2] sm:$0x3] }
 0x28d   : > { %v1335_v63 = vadd.f32 %v1334_v62, %v1287_v37  ;;  %v1364_v16 = vpop.f32.mrf.mxu1  ;;  %v1464_v42 = vpop.f32.mrf.mxu3  ;;  %v1779_v62 = vsel %vm453_vm6, %v3044_v32, 0 }
 0x28e   : > { %v1465_v49 = vadd.f32 %v1464_v42, %v1399_v18  ;;  %v4148_v18 = vand.u32 4294901760, %v1779_v62 }
 0x28f   : > { %v1365_v46 = vadd.f32 %v1364_v16, %v1335_v63 }
 0x291   : > { %v1617_v57 = vadd.f32 %v3079_v50, %v1365_v46 }
 0x293   : > { %v4018_v58 = vmax.f32 %v1617_v57, 0.0  ;;  %v1711_v57 = vperm.slane %v3041_v19, 0 }
 0x295   : > { %1687 = vrot.lane.b32.xlu2 %v4018_v58, %s3092_s10  ;;  %1703 = vrot.lane.b32.xlu0 %v4018_v58, %s3091_s9  ;;  %v4094_v47 = vand.u32 4294901760, %v4018_v58 }
 0x296   : > { %1735 = vrot.lane.b32.xlu1 %v4018_v58, %s3090_s8 }
 0x297   : > { %v1504_v43 = vpop.f32.mrf.mxu0  ;;  %v4117_v31 = vsub.f32 %v4018_v58, %v4094_v47 }
 0x298   : > { %v1505_v35 = vadd.f32 %v1504_v43, %v1465_v49 }
 0x299   : > { %v1848_v16 = vand.u32 4294901760, %v4117_v31 }
 0x29d   : > { %1637 = vrot.lane.b32.xlu2 %v4018_v58, %s3095_s13  ;;  %1653 = vrot.lane.b32.xlu0 %v4018_v58, %s3094_s12 }
 0x29e   : > { %1719 = vrot.lane.b32.xlu1 %v4018_v58, %s3089_s30 }
 0x29f   : > { %v1536_v38 = vpop.f32.mrf.mxu1  ;;  %v1584_v28 = vpop.f32.mrf.mxu2 }
 0x2a0   : > { %v1537_v51 = vadd.f32 %v1536_v38, %v1505_v35  ;;  %v1614_v1 = vpop.f32.mrf.mxu3  ;;  %v1728_v35 = vperm.slane %v4072_v12, 1 }
 0x2a2   : > { %v1585_v23 = vadd.f32 %v1584_v28, %v1537_v51  ;;  %v4159_v28 = vsub.f32 %v4117_v31, %v1848_v16 }
 0x2a4   : > { %v1615_v36 = vadd.f32 %v1614_v1, %v1585_v23 }
 0x2a6   : > { %v1618_v3 = vadd.f32 %v3080_v40, %v1615_v36  ;;  %1669 = vrot.lane.b32.xlu1 %v4018_v58, %s3093_s11  ;;  %v1645_v36 = vperm.slane %v4146_v14, 0  ;;  %v1712_v40 = vperm.slane %v3041_v19, 1 }
 0x2a8   : > { %v4035_v59 = vmax.f32 %v1618_v3, 0.0  ;;  %v4169_v3 = vld [vmem:[%s4886_s6 + $0x4] sm:$0x3] }
 0x2aa   : > { %1737 = vrot.lane.b32.xlu2 %v4035_v59, %s3090_s8  ;;  %1689 = vrot.lane.b32.xlu0 %v4035_v59, %s3092_s10  ;;  %v4175_v26 = vand.u32 4294901760, %v4035_v59 }
 0x2ae   : > { %1705 = vrot.lane.b32.xlu1 %v4035_v59, %s3091_s9 }
 0x2b2   : > { %1721 = vrot.lane.b32.xlu2 %v4035_v59, %s3089_s30  ;;  %1639 = vrot.lane.b32.xlu0 %v4035_v59, %s3095_s13 }
 0x2b6   : > { %1655 = vrot.lane.b32.xlu1 %v4035_v59, %s3094_s12 }
 0x2ba   : > { %1671 = vrot.lane.b32.xlu2 %v4035_v59, %s3093_s11  ;;  %1775 = vperm.xlu0 %3077, %v3045_v61  }
 0x2be   : > { %1621 = vrot.lane.b32.xlu1 %v4018_v58, %s3096_s14 }
 0x2c2   : > { %1623 = vrot.lane.b32.xlu2 %v4035_v59, %s3096_s14 }
 0x2ef   : > { %v4058_v53 = vpop.permute.xlu2 %1687 }
 0x2f7   : > { %v4060_v41 = vpop.permute.xlu2 %1637 }
 0x304   : > { %v1738_v9 = vpop.permute.xlu2 %1737 }
 0x307   : > { %v4067_v25 = vpop.permute.xlu0 %1703 }
 0x308   : > { %v1736_v27 = vpop.permute.xlu1 %1735 }
 0x309   : > { %v1739_v39 = vsel %vm414_vm2, %v1736_v27, %v1738_v9  ;;  %v1740_v37 = vsel %vm414_vm2, %v1738_v9, %v1736_v27 }
 0x30a   : > { %v1747_v44 = vmul.f32 %v1743_v52, %v1739_v39  ;;  %v1748_v42 = vmul.f32 %v1744_v22, %v1740_v37  ;;  %v1646_v37 = vperm.slane %v4146_v14, 1 }
 0x30c   : > { %v4074_v2 = vand.u32 4294901760, %v1747_v44  ;;  %v1722_v10 = vpop.permute.xlu2 %1721  ;;  %v4177_v9 = vand.u32 4294901760, %v1748_v42 }
 0x30e   : > { %v4077_v0 = vsub.f32 %v1747_v44, %v4074_v2  ;;  %1789 = vmatpush.msra.mxu0 %v4074_v2  ;;  %1929 = vmatpush.msra.mxu3 %v4074_v2  ;;  %v4185_v44 = vsub.f32 %v1779_v62, %v4148_v18 }
 0x30f   : > { %v4089_v6 = vpop.permute.xlu0 %1653 }
 0x310   : > { %v1824_v15 = vand.u32 4294901760, %v4077_v0  ;;  %1890 = vmatpush.msra.mxu2 %v4077_v0  ;;  %v1720_v13 = vpop.permute.xlu1 %1719  ;;  %v4218_v19 = vand.u32 4294901760, %v4185_v44 }
 0x311   : > { %v1723_v60 = vsel %vm396_vm1, %v1720_v13, %v1722_v10  ;;  %v1724_v51 = vsel %vm396_vm1, %v1722_v10, %v1720_v13  ;;  %v1850_v13 = vand.u32 4294901760, %v4159_v28 }
 0x312   : > { %v1731_v55 = vmul.f32 %v1727_v54, %v1723_v60  ;;  %v1825_v7 = vsub.f32 %v4077_v0, %v1824_v15  ;;  %v1732_v12 = vmul.f32 %v1728_v35, %v1724_v51  ;;  %v1696_v54 = vperm.slane %v4109_v34, 1 }
 0x314   : > { %v4091_v45 = vand.u32 4294901760, %v1731_v55  ;;  %v1826_v24 = vand.u32 4294901760, %v1825_v7  ;;  %v4122_v8 = vpop.permute.xlu2 %1671  ;;  %v4220_v22 = vand.u32 4294901760, %v1732_v12 }
 0x316   : > { %1791 = vmatpush.msra.mxu0 %v4091_v45  ;;  %1827 = vmatpush.msra.mxu1 %v1826_v24  ;;  %v4098_v20 = vsub.f32 %v1731_v55, %v4091_v45  ;;  %v1661_v55 = vperm.slane %v4169_v3, 0  ;;  %v4259_v51 = vsub.f32 %v1732_v12, %v4220_v22 }
 0x317   : > { %1931 = vmatpush.msra.mxu3 %v4091_v45 }
 0x318   : > { %1893 = vmatpush.msra.mxu2 %v4098_v20  ;;  %v4112_v30 = vpop.permute.xlu1 %1669  ;;  %v1830_v33 = vand.u32 4294901760, %v4098_v20 }
 0x319   : > { %v1674_v11 = vsel %vm340_vm4, %v4122_v8, %v4112_v30  ;;  %v1673_v62 = vsel %vm340_vm4, %v4112_v30, %v4122_v8  ;;  %v1627_v8 = vld [vmem:[%s4886_s6] sm:$0x3] }
 0x31a   : > { %v1831_v21 = vsub.f32 %v4098_v20, %v1830_v33  ;;  %v1681_v46 = vmul.f32 %v1677_v5, %v1674_v11  ;;  %v4207_v5 = vsub.f32 %v4035_v59, %v4175_v26 }
 0x31c   : > { %v1690_v56 = vpop.permute.xlu0 %1689  ;;  %v1832_v29 = vand.u32 4294901760, %v1831_v21  ;;  %v4163_v1 = vand.u32 4294901760, %v1681_v46 }
 0x31d   : > { %v1691_v63 = vsel %vm360_vm3, %v4058_v53, %v1690_v56  ;;  %v1692_v60 = vsel %vm360_vm3, %v1690_v56, %v4058_v53  ;;  %v4210_v53 = vsub.f32 %v1748_v42, %v4177_v9 }
 0x31e   : > { %v1699_v50 = vmul.f32 %v1695_v17, %v1691_v63  ;;  %1833 = vmatpush.msra.mxu1 %v1832_v29  ;;  %v4199_v7 = vsub.f32 %v1681_v46, %v4163_v1  ;;  %v1678_v17 = vperm.slane %v4104_v48, 1  ;;  %v1700_v56 = vmul.f32 %v1696_v54, %v1692_v60 }
 0x31f   : > { %v2074_v42 = vand.u32 4294901760, %v4210_v53 }
 0x320   : > { %v4150_v43 = vand.u32 4294901760, %v1699_v50  ;;  %v1706_v49 = vpop.permute.xlu1 %1705  ;;  %v1854_v46 = vand.u32 4294901760, %v4199_v7 }
 0x321   : > { %v1707_v38 = vsel %vm378_vm0, %v4067_v25, %v1706_v49  ;;  %v1708_v52 = vsel %vm378_vm0, %v1706_v49, %v4067_v25  ;;  %v1662_v49 = vperm.slane %v4169_v3, 1  ;;  %v1682_v3 = vmul.f32 %v1678_v17, %v1673_v62 }
 0x322   : > { %v1715_v23 = vmul.f32 %v1711_v57, %v1707_v38  ;;  %v4172_v61 = vsub.f32 %v1699_v50, %v4150_v43  ;;  %v1716_v24 = vmul.f32 %v1712_v40, %v1708_v52  ;;  %v1809_v38 = vsub.f32 %v4185_v44, %v4218_v19 }
 0x323   : > { %v1629_v52 = vperm.slane %v1627_v8, 0  ;;  %v1855_v12 = vsub.f32 %v4199_v7, %v1854_v46 }
 0x324   : > { %v4182_v27 = vand.u32 4294901760, %v1715_v23  ;;  %v1640_v39 = vpop.permute.xlu0 %1639  ;;  %v1842_v32 = vand.u32 4294901760, %v4172_v61  ;;  %v4235_v50 = vand.u32 4294901760, %v1716_v24 }
 0x325   : > { %v1642_v10 = vsel %vm304_vm7, %v1640_v39, %v4060_v41 }
 0x326   : > { %v1649_v25 = vmul.f32 %v1645_v36, %v1642_v10  ;;  %1793 = vmatpush.msra.mxu0 %v4182_v27  ;;  %1933 = vmatpush.msra.mxu3 %v4182_v27  ;;  %v4202_v34 = vsub.f32 %v1715_v23, %v4182_v27  ;;  %v1843_v30 = vsub.f32 %v4172_v61, %v1842_v32  ;;  %v4261_v23 = vand.u32 4294901760, %v1700_v56 }
 0x327   : > { %v4276_v10 = vsub.f32 %v1716_v24, %v4235_v50 }
 0x328   : > { %v4213_v21 = vand.u32 4294901760, %v1649_v25  ;;  %1795 = vmatpush.msra.mxu0 %v4150_v43  ;;  %1935 = vmatpush.msra.mxu3 %v4150_v43  ;;  %v1656_v11 = vpop.permute.xlu1 %1655  ;;  %v1836_v48 = vand.u32 4294901760, %v4202_v34  ;;  %v1844_v60 = vand.u32 4294901760, %v1843_v30  ;;  %v4298_v30 = vand.u32 4294901760, %v1682_v3 }
 0x329   : > { %1896 = vmatpush.msra.mxu2 %v4202_v34  ;;  %v1658_v29 = vsel %vm322_vm5, %v1656_v11, %v4089_v6  ;;  %v1657_v36 = vsel %vm322_vm5, %v4089_v6, %v1656_v11  ;;  %v1641_v6 = vsel %vm304_vm7, %v4060_v41, %v1640_v39  ;;  %v1630_v11 = vperm.slane %v1627_v8, 1 }
 0x32a   : > { %v1665_v63 = vmul.f32 %v1661_v55, %v1658_v29  ;;  %1797 = vmatpush.msra.mxu0 %v4094_v47  ;;  %1937 = vmatpush.msra.mxu3 %v4094_v47  ;;  %v1837_v57 = vsub.f32 %v4202_v34, %v1836_v48  ;;  %v4248_v14 = vsub.f32 %v1649_v25, %v4213_v21  ;;  %v1624_v55 = vpop.permute.xlu2 %1623 }
 0x32b   : > { %1899 = vmatpush.msra.mxu2 %v4172_v61  ;;  %v1666_v17 = vmul.f32 %v1662_v49, %v1657_v36  ;;  %v2075_v41 = vsub.f32 %v4210_v53, %v2074_v42  ;;  %v4290_v39 = vsub.f32 %v1700_v56, %v4261_v23  ;;  %v1650_v8 = vmul.f32 %v1646_v37, %v1641_v6 }
 0x32c   : > { %v4252_v35 = vand.u32 4294901760, %v1665_v63  ;;  %1799 = vmatpush.msra.mxu0 %v4163_v1  ;;  %1939 = vmatpush.msra.mxu3 %v4163_v1  ;;  %v1838_v40 = vand.u32 4294901760, %v1837_v57  ;;  %v1866_v25 = vand.u32 4294901760, %v4248_v14  ;;  %v2080_v57 = vand.u32 4294901760, %v4259_v51 }
 0x32d   : > { %1902 = vmatpush.msra.mxu2 %v4117_v31  ;;  %v1856_v36 = vand.u32 4294901760, %v1855_v12  ;;  %v4312_v37 = vand.u32 4294901760, %v1666_v17  ;;  %v4323_v12 = vand.u32 4294901760, %v1650_v8 }
 0x32e   : > { %1801 = vmatpush.msra.mxu0 %v4252_v35  ;;  %1941 = vmatpush.msra.mxu3 %v4252_v35  ;;  %v4270_v54 = vsub.f32 %v1665_v63, %v4252_v35  ;;  %v2081_v28 = vsub.f32 %v4259_v51, %v2080_v57 }
 0x32f   : > { %1839 = vmatpush.msra.mxu1 %v1838_v40  ;;  %1905 = vmatpush.msra.mxu2 %v4199_v7  ;;  %v4306_v40 = vand.u32 4294901760, %v1809_v38  ;;  %v4321_v38 = vsub.f32 %v1682_v3, %v4298_v30  ;;  %v4335_v3 = vsub.f32 %v1666_v17, %v4312_v37  ;;  %v4348_v17 = vsub.f32 %v1650_v8, %v4323_v12 }
 0x330   : > { %v1622_v29 = vpop.permute.xlu1 %1621  ;;  %1803 = vmatpush.msra.mxu0 %v4213_v21  ;;  %1943 = vmatpush.msra.mxu3 %v4213_v21  ;;  %v1860_v24 = vand.u32 4294901760, %v4270_v54 }
 0x331   : > { %1845 = vmatpush.msra.mxu1 %v1844_v60  ;;  %v1625_v62 = vsel %vm287_vm8, %v1622_v29, %v1624_v55  ;;  %v1626_v63 = vsel %vm287_vm8, %v1624_v55, %v1622_v29  ;;  %1908 = vmatpush.msra.mxu2 %v4270_v54  ;;  %v1867_v60 = vsub.f32 %v4248_v14, %v1866_v25  ;;  %v2086_v55 = vand.u32 4294901760, %v4276_v10 }
 0x332   : > { %v1633_v49 = vmul.f32 %v1629_v52, %v1626_v63  ;;  %v1861_v56 = vsub.f32 %v4270_v54, %v1860_v24  ;;  %v1634_v52 = vmul.f32 %v1630_v11, %v1625_v62  ;;  %v2076_v11 = vand.u32 4294901760, %v2075_v41 }
 0x333   : > { %1851 = vmatpush.msra.mxu1 %v1850_v13  ;;  %1911 = vmatpush.msra.mxu2 %v4248_v14  ;;  %v2092_v13 = vand.u32 4294901760, %v4290_v39  ;;  %v1868_v63 = vand.u32 4294901760, %v1867_v60  ;;  %v2082_v60 = vand.u32 4294901760, %v2081_v28  ;;  %v2110_v8 = vand.u32 4294901760, %v4335_v3 }
 0x334   : > { %v4314_v6 = vand.u32 4294901760, %v1633_v49  ;;  %v1862_v29 = vand.u32 4294901760, %v1861_v56  ;;  %v2087_v56 = vsub.f32 %v4276_v10, %v2086_v55 }
 0x335   : > { %1857 = vmatpush.msra.mxu1 %v1856_v36  ;;  %v4337_v36 = vand.u32 4294901760, %v1634_v52 }
 0x336   : > { %1805 = vmatpush.msra.mxu0 %v4314_v6  ;;  %1945 = vmatpush.msra.mxu3 %v4314_v6  ;;  %v4328_v62 = vsub.f32 %v1633_v49, %v4314_v6  ;;  %v2098_v49 = vand.u32 4294901760, %v4207_v5  ;;  %v2088_v28 = vand.u32 4294901760, %v2087_v56 }
 0x337   : > { %1863 = vmatpush.msra.mxu1 %v1862_v29  ;;  %1811 = vmatmul.f32.vlgmr.msra.gmra.mxu0 %v4306_v40  ;;  %v2093_v29 = vsub.f32 %v4290_v39, %v2092_v13 }
 0x338   : > { %1963 = vmatpush.msrb.mxu0 %v1824_v15  ;;  %2077 = vmatpush.msrb.mxu3 %v2076_v11  ;;  %v1872_v41 = vand.u32 4294901760, %v4328_v62  ;;  %v2104_v15 = vand.u32 4294901760, %v4321_v38  ;;  %v4357_v11 = vsub.f32 %v1634_v52, %v4337_v36 }
 0x339   : > { %1869 = vmatpush.msra.mxu1 %v1868_v63  ;;  %1914 = vmatpush.msra.mxu2 %v4328_v62  ;;  %v2111_v63 = vsub.f32 %v4335_v3, %v2110_v8 }
 0x33a   : > { %1967 = vmatpush.msrb.mxu0 %v1830_v33  ;;  %v1873_v0 = vsub.f32 %v4328_v62, %v1872_v41  ;;  %2083 = vmatpush.msrb.mxu3 %v2082_v60  ;;  %v2099_v33 = vsub.f32 %v4207_v5, %v2098_v49  ;;  %v2094_v62 = vand.u32 4294901760, %v2093_v29  ;;  %v2105_v34 = vsub.f32 %v4321_v38, %v2104_v15 }
 0x33b   : > { %2039 = vmatpush.msrb.mxu2 %v4177_v9  ;;  %1949 = vmatmul.f32.vlgmr.msra.gmra.mxu3 %v4218_v19  ;;  %v2122_v61 = vand.u32 4294901760, %v4357_v11 }
 0x33c   : > { %1917 = vmatmul.f32.vlgmr.msra.gmra.mxu2 %v4185_v44  ;;  %1971 = vmatpush.msrb.mxu0 %v1836_v48  ;;  %v1874_v20 = vand.u32 4294901760, %v1873_v0  ;;  %v2116_v48 = vand.u32 4294901760, %v4348_v17  ;;  %v2100_v52 = vand.u32 4294901760, %v2099_v33 }
 0x33d   : > { %2041 = vmatpush.msrb.mxu2 %v4220_v22  ;;  %2089 = vmatpush.msrb.mxu3 %v2088_v28  ;;  %v2123_v56 = vsub.f32 %v4357_v11, %v2122_v61 }
 0x33e   : > { %1975 = vmatpush.msrb.mxu0 %v1842_v32  ;;  %1875 = vmatpush.msra.mxu1 %v1874_v20  ;;  %v2106_v32 = vand.u32 4294901760, %v2105_v34  ;;  %v2117_v31 = vsub.f32 %v4348_v17, %v2116_v48  ;;  %v3049_v20 = vld [vmem:[%s4886_s6 + $0xa] sm:$0x3] }
 0x33f   : > { %2043 = vmatpush.msrb.mxu2 %v4235_v50  ;;  %2095 = vmatpush.msrb.mxu3 %v2094_v62 }
 0x340   : > { %1979 = vmatpush.msrb.mxu0 %v1848_v16  ;;  %1877 = vmatmul.f32.vlgmr.msra.gmra.mxu1 %v4148_v18  ;;  %v2112_v16 = vand.u32 4294901760, %v2111_v63  ;;  %v2357_v63 = vperm.slane %v3049_v20, 0 }
 0x341   : > { %2045 = vmatpush.msrb.mxu2 %v4261_v23  ;;  %2009 = vmatpush.msrb.mxu1 %v4074_v2  ;;  %v2118_v2 = vand.u32 4294901760, %v2117_v31 }
 0x342   : > { %2101 = vmatpush.msrb.mxu3 %v2100_v52  ;;  %1983 = vmatpush.msrb.mxu0 %v1854_v46 }
 0x343   : > { %2047 = vmatpush.msrb.mxu2 %v4175_v26  ;;  %2011 = vmatpush.msrb.mxu1 %v4091_v45  ;;  %v2124_v45 = vand.u32 4294901760, %v2123_v56 }
 0x344   : > { %2107 = vmatpush.msrb.mxu3 %v2106_v32  ;;  %1987 = vmatpush.msrb.mxu0 %v1860_v24 }
 0x345   : > { %2049 = vmatpush.msrb.mxu2 %v4298_v30  ;;  %2013 = vmatpush.msrb.mxu1 %v4182_v27 }
 0x346   : > { %2113 = vmatpush.msrb.mxu3 %v2112_v16  ;;  %1991 = vmatpush.msrb.mxu0 %v1866_v25  ;;  %v3051_v16 = vld [vmem:[%s4886_s6 + $0xe] sm:$0x3] }
 0x347   : > { %2051 = vmatpush.msrb.mxu2 %v4312_v37  ;;  %2015 = vmatpush.msrb.mxu1 %v4150_v43  ;;  %v1776_v43 = vpop.permute.xlu0 %1775 }
 0x348   : > { %2119 = vmatpush.msrb.mxu3 %v2118_v2  ;;  %1995 = vmatpush.msrb.mxu0 %v1872_v41 }
 0x349   : > { %2053 = vmatpush.msrb.mxu2 %v4323_v12  ;;  %2017 = vmatpush.msrb.mxu1 %v4094_v47 }
 0x34a   : > { %2125 = vmatpush.msrb.mxu3 %v2124_v45  ;;  %1997 = vmatmul.f32.vlgmr.msrb.gmra.mxu0 %v4148_v18 }
 0x34b   : > { %2140 = vmatpush.msra.mxu0 %v4210_v53  ;;  %2019 = vmatpush.msrb.mxu1 %v4163_v1 }
 0x34c   : > { %2259 = vmatpush.msra.mxu3 %v4177_v9  ;;  %2055 = vmatpush.msrb.mxu2 %v4337_v36 }
 0x34d   : > { %2061 = vmatmul.f32.vlgmr.msrb.gmra.mxu2 %v4306_v40  ;;  %2143 = vmatpush.msra.mxu0 %v4259_v51 }
 0x34e   : > { %2261 = vmatpush.msra.mxu3 %v4220_v22  ;;  %2213 = vmatpush.msra.mxu2 %v2074_v42 }
 0x34f   : > { %2021 = vmatpush.msrb.mxu1 %v4252_v35  ;;  %2127 = vmatmul.f32.vlgmr.msrb.gmra.mxu3 %v4148_v18 }
 0x350   : > { %2146 = vmatpush.msra.mxu0 %v4276_v10  ;;  %2217 = vmatpush.msra.mxu2 %v2080_v57 }
 0x351   : > { %2263 = vmatpush.msra.mxu3 %v4235_v50  ;;  %2023 = vmatpush.msrb.mxu1 %v4213_v21 }
 0x352   : > { %2149 = vmatpush.msra.mxu0 %v4290_v39  ;;  %2221 = vmatpush.msra.mxu2 %v2086_v55 }
 0x353   : > { %2265 = vmatpush.msra.mxu3 %v4261_v23  ;;  %2025 = vmatpush.msrb.mxu1 %v4314_v6 }
 0x354   : > { %2152 = vmatpush.msra.mxu0 %v4207_v5  ;;  %2027 = vmatmul.f32.vlgmr.msrb.gmra.mxu1 %v4148_v18 }
 0x355   : > { %2225 = vmatpush.msra.mxu2 %v2092_v13  ;;  %2179 = vmatpush.msra.mxu1 %v4177_v9 }
 0x356   : > { %2267 = vmatpush.msra.mxu3 %v4175_v26  ;;  %2155 = vmatpush.msra.mxu0 %v4321_v38 }
 0x357   : > { %2229 = vmatpush.msra.mxu2 %v2098_v49  ;;  %2181 = vmatpush.msra.mxu1 %v4220_v22 }
 0x358   : > { %2269 = vmatpush.msra.mxu3 %v4298_v30  ;;  %2158 = vmatpush.msra.mxu0 %v4335_v3 }
 0x359   : > { %2233 = vmatpush.msra.mxu2 %v2104_v15  ;;  %2183 = vmatpush.msra.mxu1 %v4235_v50 }
 0x35a   : > { %2271 = vmatpush.msra.mxu3 %v4312_v37  ;;  %2161 = vmatpush.msra.mxu0 %v4348_v17 }
 0x35b   : > { %2237 = vmatpush.msra.mxu2 %v2110_v8  ;;  %2185 = vmatpush.msra.mxu1 %v4261_v23 }
 0x35c   : > { %2273 = vmatpush.msra.mxu3 %v4323_v12  ;;  %2164 = vmatpush.msra.mxu0 %v4357_v11 }
 0x35d   : > { %2241 = vmatpush.msra.mxu2 %v2116_v48  ;;  %2187 = vmatpush.msra.mxu1 %v4175_v26  ;;  %v3050_v48 = vld [vmem:[%s4886_s6 + $0xc] sm:$0x3] }
 0x35e   : > { %2275 = vmatpush.msra.mxu3 %v4337_v36  ;;  %2167 = vmatmul.f32.vlgmr.msra.gmra.mxu0 %v4185_v44  ;;  %v2373_v31 = vperm.slane %v3050_v48, 0 }
 0x35f   : > { %2245 = vmatpush.msra.mxu2 %v2122_v61  ;;  %2189 = vmatpush.msra.mxu1 %v4298_v30  ;;  %v2947_v30 = vld [vmem:[%s4885_s5] sm:$0xff] }
 0x360   : > { %2247 = vmatmul.f32.vlgmr.msra.gmra.mxu2 %v4148_v18  ;;  %2277 = vmatmul.f32.vlgmr.msra.gmra.mxu3 %v4148_v18 }
 0x361   : > { %2191 = vmatpush.msra.mxu1 %v4312_v37  ;;  %v3052_v37 = vld [vmem:[%s4886_s6 + $0x10] sm:$0x3] }
 0x362   : > { %v2405_v6 = vperm.slane %v3052_v37, 0  ;;  %v2406_v33 = vperm.slane %v3052_v37, 1 }
 0x363   : > { %2193 = vmatpush.msra.mxu1 %v4323_v12 }
 0x365   : > { %2195 = vmatpush.msra.mxu1 %v4337_v36 }
 0x366   : > { %2199 = vmatmul.f32.vlgmr.msra.gmra.mxu1 %v4218_v19 }
 0x3b4   : > { %v1812_v47 = vpop.f32.mrf.mxu0 }
 0x3b5   : > { %v1813_v26 = vadd.f32 %v1812_v47, %v1776_v43 }
 0x3bd   : > { %v1878_v1 = vpop.f32.mrf.mxu1 }
 0x3be   : > { %v1879_v9 = vadd.f32 %v1878_v1, %v1813_v26  ;;  %v1950_v7 = vpop.f32.mrf.mxu3  ;;  %v4544_v26 = vld [vmem:[%s4886_s6 + $0x2] sm:$0x3] }
 0x3bf   : > { %v1918_v27 = vpop.f32.mrf.mxu2 }
 0x3c0   : > { %v1919_v44 = vadd.f32 %v1918_v27, %v1879_v9 }
 0x3c2   : > { %v1951_v53 = vadd.f32 %v1950_v7, %v1919_v44  ;;  %v4549_v44 = vld [vmem:[%s4886_s6 + $0x4] sm:$0x3] }
 0x3c7   : > { %v1998_v5 = vpop.f32.mrf.mxu0 }
 0x3c8   : > { %v1999_v21 = vadd.f32 %v1998_v5, %v1951_v53 }
 0x3d0   : > { %v2062_v19 = vpop.f32.mrf.mxu2 }
 0x3d1   : > { %v2028_v18 = vpop.f32.mrf.mxu1  ;;  %v2063_v50 = vadd.f32 %v2062_v19, %v1776_v43  ;;  %v2389_v43 = vperm.slane %v3051_v16, 0  ;;  %v2307_v19 = vperm.slane %v4544_v26, 0 }
 0x3d2   : > { %v2029_v22 = vadd.f32 %v2028_v18, %v1999_v21  ;;  %v2128_v14 = vpop.f32.mrf.mxu3  ;;  %v2390_v21 = vperm.slane %v3051_v16, 1 }
 0x3d3   : > { %v2129_v35 = vadd.f32 %v2128_v14, %v2063_v50 }
 0x3d4   : > { %v2281_v46 = vmax.f32 %v2029_v22, 0.0  ;;  %v2358_v22 = vperm.slane %v3049_v20, 1 }
 0x3d6   : > { %2365 = vrot.lane.b32.xlu2 %v2281_v46, %s3091_s9  ;;  %2381 = vrot.lane.b32.xlu0 %v2281_v46, %s3089_s30  ;;  %v4506_v17 = vand.u32 4294901760, %v2281_v46 }
 0x3d7   : > { %2397 = vrot.lane.b32.xlu1 %v2281_v46, %s3090_s8 }
 0x3d8   : > { %v4512_v28 = vsub.f32 %v2281_v46, %v4506_v17 }
 0x3da   : > { %v2510_v52 = vand.u32 4294901760, %v4512_v28 }
 0x3db   : > { %v2168_v42 = vpop.f32.mrf.mxu0 }
 0x3dc   : > { %v2169_v51 = vadd.f32 %v2168_v42, %v2129_v35  ;;  %v4535_v56 = vsub.f32 %v4512_v28, %v2510_v52 }
 0x3de   : > { %2315 = vrot.lane.b32.xlu2 %v2281_v46, %s3094_s12  ;;  %2331 = vrot.lane.b32.xlu0 %v2281_v46, %s3093_s11  ;;  %v2512_v7 = vand.u32 4294901760, %v4535_v56 }
 0x3df   : > { %2349 = vrot.lane.b32.xlu1 %v2281_v46, %s3092_s10 }
 0x3e3   : > { %v2200_v23 = vpop.f32.mrf.mxu1  ;;  %v2248_v54 = vpop.f32.mrf.mxu2 }
 0x3e4   : > { %v2201_v10 = vadd.f32 %v2200_v23, %v2169_v51  ;;  %v2278_v25 = vpop.f32.mrf.mxu3  ;;  %v2374_v51 = vperm.slane %v3050_v48, 1  ;;  %v2323_v23 = vperm.slane %v4549_v44, 0 }
 0x3e6   : > { %v2249_v24 = vadd.f32 %v2248_v54, %v2201_v10  ;;  %v3048_v54 = vld [vmem:[%s4886_s6 + $0x6] sm:$0x3] }
 0x3e7   : > { %2299 = vrot.lane.b32.xlu1 %v2281_v46, %s3095_s13 }
 0x3e8   : > { %v2279_v39 = vadd.f32 %v2278_v25, %v2249_v24 }
 0x3ea   : > { %v4468_v57 = vmax.f32 %v2279_v39, 0.0 }
 0x3ec   : > { %2399 = vrot.lane.b32.xlu2 %v4468_v57, %s3090_s8  ;;  %2367 = vrot.lane.b32.xlu0 %v4468_v57, %s3091_s9 }
 0x3ef   : > { %2383 = vrot.lane.b32.xlu1 %v4468_v57, %s3089_s30 }
 0x3f4   : > { %2351 = vrot.lane.b32.xlu2 %v4468_v57, %s3092_s10  ;;  %2317 = vrot.lane.b32.xlu0 %v4468_v57, %s3094_s12 }
 0x3f7   : > { %2333 = vrot.lane.b32.xlu1 %v4468_v57, %s3093_s11  ;;  %s278_s11 = scalar_lea.vmem %s4887_s7, %s3057_s26 }
 0x3fc   : > { %2301 = vrot.lane.b32.xlu2 %v4468_v57, %s3095_s13  ;;  %2283 = vrot.lane.b32.xlu0 %v2281_v46, %s3096_s14 }
 0x3ff   : > { %2285 = vrot.lane.b32.xlu1 %v4468_v57, %s3096_s14 }
 0x404   : > { %2950 = vperm.xlu0 %3077, %v2947_v30   ;;  %v2308_v30 = vperm.slane %v4544_v26, 1 }
 0x430   : > { %v2366_v40 = vpop.permute.xlu2 %2365 }
 0x438   : > { %v4490_v55 = vpop.permute.xlu2 %2315 }
 0x446   : > { %v2400_v13 = vpop.permute.xlu2 %2399 }
 0x448   : > { %v2382_v36 = vpop.permute.xlu0 %2381 }
 0x449   : > { %v2398_v38 = vpop.permute.xlu1 %2397 }
 0x44a   : > { %v2401_v12 = vsel %vm414_vm2, %v2398_v38, %v2400_v13  ;;  %v2402_v8 = vsel %vm414_vm2, %v2400_v13, %v2398_v38  ;;  %v4587_v38 = vld [vmem:[%s4886_s6] sm:$0x3] }
 0x44b   : > { %v2409_v3 = vmul.f32 %v2405_v6, %v2401_v12  ;;  %v2410_v32 = vmul.f32 %v2406_v33, %v2402_v8  ;;  %v4590_v12 = vand.u32 4294901760, %v4468_v57 }
 0x44d   : > { %v4497_v41 = vand.u32 4294901760, %v2409_v3  ;;  %v4539_v1 = vand.u32 4294901760, %v2410_v32 }
 0x44e   : > { %v2352_v62 = vpop.permute.xlu2 %2351 }
 0x44f   : > { %v4500_v49 = vsub.f32 %v2409_v3, %v4497_v41  ;;  %2451 = vmatpush.msrb.mxu0 %v4497_v41  ;;  %2591 = vmatpush.msrb.mxu3 %v4497_v41  ;;  %v4562_v42 = vsub.f32 %v2410_v32, %v4539_v1  ;;  %v2324_v3 = vperm.slane %v4549_v44, 1 }
 0x450   : > { %v4514_v11 = vpop.permute.xlu0 %2331 }
 0x451   : > { %v2486_v60 = vand.u32 4294901760, %v4500_v49  ;;  %2552 = vmatpush.msrb.mxu2 %v4500_v49  ;;  %v2350_v29 = vpop.permute.xlu1 %2349  ;;  %v2736_v8 = vand.u32 4294901760, %v4562_v42 }
 0x452   : > { %v2353_v61 = vsel %vm360_vm3, %v2350_v29, %v2352_v62  ;;  %v2354_v10 = vsel %vm360_vm3, %v2352_v62, %v2350_v29  ;;  %v2339_v29 = vperm.slane %v3048_v54, 0  ;;  %v2340_v62 = vperm.slane %v3048_v54, 1 }
 0x453   : > { %v2487_v0 = vsub.f32 %v4500_v49, %v2486_v60  ;;  %v2361_v2 = vmul.f32 %v2357_v63, %v2353_v61  ;;  %v2291_v61 = vperm.slane %v4587_v38, 0 }
 0x455   : > { %v2488_v15 = vand.u32 4294901760, %v2487_v0  ;;  %v4552_v5 = vand.u32 4294901760, %v2361_v2  ;;  %v2362_v0 = vmul.f32 %v2358_v22, %v2354_v10 }
 0x456   : > { %v2302_v46 = vpop.permute.xlu2 %2301 }
 0x457   : > { %2489 = vmatpush.msrb.mxu1 %v2488_v15  ;;  %v4582_v13 = vsub.f32 %v2361_v2, %v4552_v5 }
 0x459   : > { %v4521_v34 = vpop.permute.xlu1 %2299  ;;  %v2504_v2 = vand.u32 4294901760, %v4582_v13 }
 0x45a   : > { %v2304_v35 = vsel %vm304_vm7, %v2302_v46, %v4521_v34 }
 0x45e   : > { %v2368_v45 = vpop.permute.xlu0 %2367 }
 0x45f   : > { %v2369_v47 = vsel %vm378_vm0, %v2366_v40, %v2368_v45  ;;  %v2370_v25 = vsel %vm378_vm0, %v2368_v45, %v2366_v40  ;;  %v2311_v40 = vmul.f32 %v2307_v19, %v2304_v35  ;;  %v2292_v19 = vperm.slane %v4587_v38, 1 }
 0x460   : > { %v2377_v9 = vmul.f32 %v2373_v31, %v2369_v47  ;;  %v2378_v15 = vmul.f32 %v2374_v51, %v2370_v25 }
 0x461   : > { %v2384_v27 = vpop.permute.xlu1 %2383  ;;  %v4615_v45 = vand.u32 4294901760, %v2311_v40 }
 0x462   : > { %v4554_v53 = vand.u32 4294901760, %v2377_v9  ;;  %v2385_v18 = vsel %vm396_vm1, %v2382_v36, %v2384_v27  ;;  %v2386_v50 = vsel %vm396_vm1, %v2384_v27, %v2382_v36  ;;  %v2303_v27 = vsel %vm304_vm7, %v4521_v34, %v2302_v46 }
 0x463   : > { %v2393_v14 = vmul.f32 %v2389_v43, %v2385_v18  ;;  %v2394_v37 = vmul.f32 %v2390_v21, %v2386_v50  ;;  %v4628_v44 = vand.u32 4294901760, %v2378_v15  ;;  %v2737_v50 = vsub.f32 %v4562_v42, %v2736_v8 }
 0x464   : > { %v4578_v39 = vsub.f32 %v2377_v9, %v4554_v53  ;;  %v4623_v9 = vand.u32 4294901760, %v2362_v0  ;;  %v4667_v54 = vsub.f32 %v2311_v40, %v4615_v45  ;;  %v2312_v25 = vmul.f32 %v2308_v30, %v2303_v27 }
 0x465   : > { %v4575_v24 = vand.u32 4294901760, %v2393_v14  ;;  %v4606_v32 = vand.u32 4294901760, %v2394_v37 }
 0x466   : > { %v2318_v6 = vpop.permute.xlu0 %2317  ;;  %v2498_v63 = vand.u32 4294901760, %v4578_v39  ;;  %v4670_v10 = vsub.f32 %v2362_v0, %v4623_v9 }
 0x467   : > { %v2320_v36 = vsel %vm322_vm5, %v2318_v6, %v4490_v55  ;;  %2453 = vmatpush.msrb.mxu0 %v4575_v24  ;;  %2593 = vmatpush.msrb.mxu3 %v4575_v24  ;;  %v4599_v33 = vsub.f32 %v2393_v14, %v4575_v24  ;;  %v2319_v21 = vsel %vm322_vm5, %v4490_v55, %v2318_v6  ;;  %v3053_v14 = vld [vmem:[%s4883_s3 + $0x8] sm:$0xff] }
 0x468   : > { %v2327_v20 = vmul.f32 %v2323_v23, %v2320_v36  ;;  %v2499_v34 = vsub.f32 %v4578_v39, %v2498_v63  ;;  %v4648_v55 = vsub.f32 %v2394_v37, %v4606_v32  ;;  %v2505_v23 = vsub.f32 %v4582_v13, %v2504_v2 }
 0x469   : > { %2455 = vmatpush.msrb.mxu0 %v4554_v53  ;;  %2595 = vmatpush.msrb.mxu3 %v4554_v53  ;;  %v2334_v48 = vpop.permute.xlu1 %2333  ;;  %v2492_v26 = vand.u32 4294901760, %v4599_v33  ;;  %v4673_v37 = vsub.f32 %v2378_v15, %v4628_v44  ;;  %v2328_v6 = vmul.f32 %v2324_v3, %v2319_v21  ;;  %v2441_v0 = vsel %vm453_vm6, %v3053_v14, 0 }
 0x46a   : > { %v4608_v31 = vand.u32 4294901760, %v2327_v20  ;;  %2555 = vmatpush.msrb.mxu2 %v4599_v33  ;;  %v2336_v16 = vsel %vm340_vm4, %v2334_v48, %v4514_v11  ;;  %v2335_v47 = vsel %vm340_vm4, %v4514_v11, %v2334_v48  ;;  %v2500_v36 = vand.u32 4294901760, %v2499_v34 }
 0x46b   : > { %v2343_v43 = vmul.f32 %v2339_v29, %v2336_v16  ;;  %2457 = vmatpush.msrb.mxu0 %v4552_v5  ;;  %2597 = vmatpush.msrb.mxu3 %v4552_v5  ;;  %v2493_v18 = vsub.f32 %v4599_v33, %v2492_v26  ;;  %v2344_v46 = vmul.f32 %v2340_v62, %v2335_v47  ;;  %v2742_v15 = vand.u32 4294901760, %v4648_v55 }
 0x46c   : > { %2558 = vmatpush.msrb.mxu2 %v4578_v39  ;;  %v4645_v22 = vsub.f32 %v2327_v20, %v4608_v31  ;;  %v2506_v16 = vand.u32 4294901760, %v2505_v23  ;;  %v4694_v27 = vand.u32 4294901760, %v2328_v6  ;;  %v2748_v4 = vand.u32 4294901760, %v4673_v37 }
 0x46d   : > { %v4634_v11 = vand.u32 4294901760, %v2343_v43  ;;  %2459 = vmatpush.msrb.mxu0 %v4506_v17  ;;  %2599 = vmatpush.msrb.mxu3 %v4506_v17  ;;  %v2494_v35 = vand.u32 4294901760, %v2493_v18  ;;  %v4680_v62 = vand.u32 4294901760, %v2344_v46  ;;  %v4703_v21 = vand.u32 4294901760, %v2441_v0 }
 0x46e   : > { %2561 = vmatpush.msrb.mxu2 %v4582_v13  ;;  %v2284_v38 = vpop.permute.xlu0 %2283  ;;  %v2522_v40 = vand.u32 4294901760, %v4645_v22  ;;  %v4710_v23 = vand.u32 4294901760, %v2312_v25  ;;  %v2749_v56 = vsub.f32 %v4673_v37, %v2748_v4 }
 0x46f   : > { %2461 = vmatpush.msrb.mxu0 %v4634_v11  ;;  %2601 = vmatpush.msrb.mxu3 %v4634_v11  ;;  %v4661_v51 = vsub.f32 %v2343_v43, %v4634_v11  ;;  %v2528_v43 = vand.u32 4294901760, %v4667_v54 }
 0x470   : > { %2564 = vmatpush.msrb.mxu2 %v4512_v28  ;;  %2495 = vmatpush.msrb.mxu1 %v2494_v35  ;;  %v2523_v35 = vsub.f32 %v4645_v22, %v2522_v40 }
 0x471   : > { %v2286_v29 = vpop.permute.xlu1 %2285  ;;  %2463 = vmatpush.msrb.mxu0 %v4608_v31  ;;  %v2516_v20 = vand.u32 4294901760, %v4661_v51  ;;  %2603 = vmatpush.msrb.mxu3 %v4608_v31 }
 0x472   : > { %v2287_v30 = vsel %vm287_vm8, %v2284_v38, %v2286_v29  ;;  %v2288_v3 = vsel %vm287_vm8, %v2286_v29, %v2284_v38  ;;  %2567 = vmatpush.msrb.mxu2 %v4661_v51  ;;  %2501 = vmatpush.msrb.mxu1 %v2500_v36  ;;  %v4713_v38 = vsub.f32 %v2344_v46, %v4680_v62  ;;  %v2738_v36 = vand.u32 4294901760, %v2737_v50 }
 0x473   : > { %v2295_v48 = vmul.f32 %v2291_v61, %v2288_v3  ;;  %2465 = vmatpush.msrb.mxu0 %v4615_v45  ;;  %v2517_v47 = vsub.f32 %v4661_v51, %v2516_v20  ;;  %2605 = vmatpush.msrb.mxu3 %v4615_v45  ;;  %v4701_v61 = vsub.f32 %v4468_v57, %v4590_v12  ;;  %v2524_v3 = vand.u32 4294901760, %v2523_v35 }
 0x474   : > { %2570 = vmatpush.msrb.mxu2 %v4645_v22  ;;  %v2296_v18 = vmul.f32 %v2292_v19, %v2287_v30  ;;  %2507 = vmatpush.msrb.mxu1 %v2506_v16  ;;  %v2743_v57 = vsub.f32 %v4648_v55, %v2742_v15  ;;  %v2754_v19 = vand.u32 4294901760, %v4670_v10  ;;  %v2529_v46 = vsub.f32 %v4667_v54, %v2528_v43 }
 0x475   : > { %v4705_v34 = vand.u32 4294901760, %v2295_v48  ;;  %v2518_v14 = vand.u32 4294901760, %v2517_v47  ;;  %v4730_v30 = vsub.f32 %v2328_v6, %v4694_v27  ;;  %v4743_v6 = vsub.f32 %v2441_v0, %v4703_v21 }
 0x476   : > { %2573 = vmatpush.msrb.mxu2 %v4667_v54  ;;  %2513 = vmatpush.msrb.mxu1 %v2512_v7  ;;  %v2760_v7 = vand.u32 4294901760, %v4701_v61  ;;  %v4739_v50 = vand.u32 4294901760, %v2296_v18  ;;  %v4746_v16 = vsub.f32 %v2312_v25, %v4710_v23  ;;  %v2744_v49 = vand.u32 4294901760, %v2743_v57 }
 0x477   : > { %2467 = vmatpush.msrb.mxu0 %v4705_v34  ;;  %v4724_v29 = vsub.f32 %v2295_v48, %v4705_v34  ;;  %2607 = vmatpush.msrb.mxu3 %v4705_v34  ;;  %v2766_v47 = vand.u32 4294901760, %v4713_v38  ;;  %v2530_v0 = vand.u32 4294901760, %v2529_v46  ;;  %v2750_v25 = vand.u32 4294901760, %v2749_v56 }
 0x478   : > { %2519 = vmatpush.msrb.mxu1 %v2518_v14  ;;  %v2761_v33 = vsub.f32 %v4701_v61, %v2760_v7  ;;  %v4764_v35 = vsub.f32 %v2296_v18, %v4739_v50 }
 0x479   : > { %2625 = vmatpush.msra.mxu0 %v2486_v60  ;;  %2739 = vmatpush.msra.mxu3 %v2738_v36  ;;  %v2534_v48 = vand.u32 4294901760, %v4724_v29  ;;  %v2755_v60 = vsub.f32 %v4670_v10, %v2754_v19  ;;  %v4768_v36 = vand.u32 4294901760, %v4743_v6 }
 0x47a   : > { %2576 = vmatpush.msrb.mxu2 %v4724_v29  ;;  %2525 = vmatpush.msrb.mxu1 %v2524_v3  ;;  %v2762_v18 = vand.u32 4294901760, %v2761_v33  ;;  %v2784_v46 = vand.u32 4294901760, %v4764_v35 }
 0x47b   : > { %2629 = vmatpush.msra.mxu0 %v2492_v26  ;;  %v2535_v14 = vsub.f32 %v4724_v29, %v2534_v48  ;;  %2745 = vmatpush.msra.mxu3 %v2744_v49  ;;  %v2772_v26 = vand.u32 4294901760, %v4730_v30  ;;  %v2756_v39 = vand.u32 4294901760, %v2755_v60  ;;  %v2778_v29 = vand.u32 4294901760, %v4746_v16 }
 0x47c   : > { %2701 = vmatpush.msra.mxu2 %v4539_v1  ;;  %2531 = vmatpush.msrb.mxu1 %v2530_v0 }
 0x47d   : > { %2633 = vmatpush.msra.mxu0 %v2498_v63  ;;  %v2536_v57 = vand.u32 4294901760, %v2535_v14  ;;  %2751 = vmatpush.msra.mxu3 %v2750_v25  ;;  %v2767_v63 = vsub.f32 %v4713_v38, %v2766_v47  ;;  %v2773_v13 = vsub.f32 %v4730_v30, %v2772_v26 }
 0x47e   : > { %2703 = vmatpush.msra.mxu2 %v4606_v32  ;;  %2611 = vmatmul.f32.vlgmr.msrb.gmra.mxu3 %v4768_v36 }
 0x47f   : > { %2637 = vmatpush.msra.mxu0 %v2504_v2  ;;  %2537 = vmatpush.msrb.mxu1 %v2536_v57  ;;  %v2471_v2 = vsub.f32 %v4743_v6, %v4768_v36  ;;  %v2768_v28 = vand.u32 4294901760, %v2767_v63 }
 0x480   : > { %2705 = vmatpush.msra.mxu2 %v4628_v44  ;;  %2757 = vmatpush.msra.mxu3 %v2756_v39 }
 0x481   : > { %2641 = vmatpush.msra.mxu0 %v2510_v52  ;;  %2671 = vmatpush.msra.mxu1 %v4497_v41  ;;  %v2779_v52 = vsub.f32 %v4746_v16, %v2778_v29  ;;  %v2774_v41 = vand.u32 4294901760, %v2773_v13  ;;  %v2472_v51 = vand.u32 4294901760, %v2471_v2 }
 0x482   : > { %2707 = vmatpush.msra.mxu2 %v4623_v9  ;;  %2763 = vmatpush.msra.mxu3 %v2762_v18 }
 0x483   : > { %2645 = vmatpush.msra.mxu0 %v2516_v20  ;;  %2673 = vmatpush.msra.mxu1 %v4575_v24  ;;  %v2785_v20 = vsub.f32 %v4764_v35, %v2784_v46  ;;  %v2780_v24 = vand.u32 4294901760, %v2779_v52 }
 0x484   : > { %2709 = vmatpush.msra.mxu2 %v4590_v12  ;;  %2769 = vmatpush.msra.mxu3 %v2768_v28 }
 0x485   : > { %2649 = vmatpush.msra.mxu0 %v2522_v40  ;;  %2675 = vmatpush.msra.mxu1 %v4554_v53  ;;  %v2786_v53 = vand.u32 4294901760, %v2785_v20 }
 0x486   : > { %2711 = vmatpush.msra.mxu2 %v4680_v62  ;;  %2775 = vmatpush.msra.mxu3 %v2774_v41 }
 0x487   : > { %2579 = vmatmul.f32.vlgmr.msrb.gmra.mxu2 %v4743_v6  ;;  %2653 = vmatpush.msra.mxu0 %v2528_v43 }
 0x488   : > { %2677 = vmatpush.msra.mxu1 %v4552_v5  ;;  %2713 = vmatpush.msra.mxu2 %v4694_v27 }
 0x489   : > { %2781 = vmatpush.msra.mxu3 %v2780_v24  ;;  %2473 = vmatmul.f32.vlgmr.msrb.gmra.mxu0 %v2472_v51 }
 0x48a   : > { %2657 = vmatpush.msra.mxu0 %v2534_v48  ;;  %2679 = vmatpush.msra.mxu1 %v4506_v17  ;;  %v3054_v17 = vld [vmem:[%s4884_s4 + $0x8] sm:$0xff] }
 0x48b   : > { %2715 = vmatpush.msra.mxu2 %v4710_v23  ;;  %2787 = vmatpush.msra.mxu3 %v2786_v53 }
 0x48c   : > { %2539 = vmatmul.f32.vlgmr.msrb.gmra.mxu1 %v4703_v21  ;;  %2802 = vmatpush.msrb.mxu0 %v4562_v42 }
 0x48d   : > { %2921 = vmatpush.msrb.mxu3 %v4539_v1  ;;  %2681 = vmatpush.msra.mxu1 %v4634_v11 }
 0x48e   : > { %2717 = vmatpush.msra.mxu2 %v4739_v50  ;;  %2805 = vmatpush.msrb.mxu0 %v4648_v55 }
 0x48f   : > { %2923 = vmatpush.msrb.mxu3 %v4606_v32  ;;  %2683 = vmatpush.msra.mxu1 %v4608_v31 }
 0x490   : > { %2875 = vmatpush.msrb.mxu2 %v2736_v8  ;;  %2808 = vmatpush.msrb.mxu0 %v4673_v37  ;;  %v2951_v37 = vpop.permute.xlu0 %2950 }
 0x491   : > { %2925 = vmatpush.msrb.mxu3 %v4628_v44  ;;  %2685 = vmatpush.msra.mxu1 %v4615_v45 }
 0x492   : > { %2879 = vmatpush.msrb.mxu2 %v2742_v15  ;;  %2659 = vmatmul.f32.vlgmr.msra.gmra.mxu0 %v4703_v21 }
 0x493   : > { %2811 = vmatpush.msrb.mxu0 %v4670_v10  ;;  %2927 = vmatpush.msrb.mxu3 %v4623_v9 }
 0x494   : > { %2883 = vmatpush.msrb.mxu2 %v2748_v4  ;;  %2687 = vmatpush.msra.mxu1 %v4705_v34 }
 0x495   : > { %2689 = vmatmul.f32.vlgmr.msra.gmra.mxu1 %v4703_v21  ;;  %2814 = vmatpush.msrb.mxu0 %v4701_v61 }
 0x496   : > { %2841 = vmatpush.msrb.mxu1 %v4539_v1  ;;  %2887 = vmatpush.msrb.mxu2 %v2754_v19 }
 0x497   : > { %2929 = vmatpush.msrb.mxu3 %v4590_v12  ;;  %2817 = vmatpush.msrb.mxu0 %v4713_v38 }
 0x498   : > { %2843 = vmatpush.msrb.mxu1 %v4606_v32  ;;  %2891 = vmatpush.msrb.mxu2 %v2760_v7 }
 0x499   : > { %2931 = vmatpush.msrb.mxu3 %v4680_v62  ;;  %2820 = vmatpush.msrb.mxu0 %v4730_v30 }
 0x49a   : > { %2845 = vmatpush.msrb.mxu1 %v4628_v44  ;;  %2895 = vmatpush.msrb.mxu2 %v2766_v47 }
 0x49b   : > { %2933 = vmatpush.msrb.mxu3 %v4694_v27  ;;  %2723 = vmatmul.f32.vlgmr.msra.gmra.mxu2 %v2472_v51 }
 0x49c   : > { %2823 = vmatpush.msrb.mxu0 %v4746_v16  ;;  %2847 = vmatpush.msrb.mxu1 %v4623_v9 }
 0x49d   : > { %2899 = vmatpush.msrb.mxu2 %v2772_v26  ;;  %2935 = vmatpush.msrb.mxu3 %v4710_v23 }
 0x49e   : > { %2789 = vmatmul.f32.vlgmr.msra.gmra.mxu3 %v4703_v21  ;;  %2826 = vmatpush.msrb.mxu0 %v4764_v35 }
 0x49f   : > { %2849 = vmatpush.msrb.mxu1 %v4590_v12  ;;  %2903 = vmatpush.msrb.mxu2 %v2778_v29 }
 0x4a0   : > { %2937 = vmatpush.msrb.mxu3 %v4739_v50  ;;  %2829 = vmatmul.f32.vlgmr.msrb.gmra.mxu0 %v4743_v6 }
 0x4a1   : > { %2851 = vmatpush.msrb.mxu1 %v4680_v62  ;;  %2907 = vmatpush.msrb.mxu2 %v2784_v46 }
 0x4a2   : > { %2437 = vperm.xlu2 %3078, %v3054_v17  }
 0x4a3   : > { %2853 = vmatpush.msrb.mxu1 %v4694_v27  ;;  %2909 = vmatmul.f32.vlgmr.msrb.gmra.mxu2 %v4703_v21 }
 0x4a5   : > { %2855 = vmatpush.msrb.mxu1 %v4710_v23 }
 0x4a6   : > { %2939 = vmatmul.f32.vlgmr.msrb.gmra.mxu3 %v4703_v21 }
 0x4a7   : > { %2857 = vmatpush.msrb.mxu1 %v4739_v50 }
 0x4a8   : > { %2861 = vmatmul.f32.vlgmr.msrb.gmra.mxu1 %v4768_v36 }
 0x4fc   : > { %v2438_v1 = vpop.permute.xlu2 %2437 }
 0x501   : > { %v2612_v45 = vpop.f32.mrf.mxu3 }
 0x506   : > { %v2474_v5 = vpop.f32.mrf.mxu0 }
 0x507   : > { %v2475_v42 = vadd.f32 %v2474_v5, %v2438_v1 }
 0x509   : > { %v2540_v12 = vpop.f32.mrf.mxu1 }
 0x50a   : > { %v2580_v8 = vpop.f32.mrf.mxu2  ;;  %v2541_v32 = vadd.f32 %v2540_v12, %v2475_v42 }
 0x50c   : > { %v2581_v31 = vadd.f32 %v2580_v8, %v2541_v32 }
 0x50e   : > { %v2613_v9 = vadd.f32 %v2612_v45, %v2581_v31 }
 0x50f   : > { %v2660_v44 = vpop.f32.mrf.mxu0 }
 0x510   : > { %v2661_v11 = vadd.f32 %v2660_v44, %v2613_v9 }
 0x512   : > { %v2690_v22 = vpop.f32.mrf.mxu1 }
 0x513   : > { %v2691_v55 = vadd.f32 %v2690_v22, %v2661_v11 }
 0x515   : > { %v2943_v54 = vadd.f32 %v2691_v55, %v4018_v58 }
 0x517   : > { %v2945_v10 = vmax.f32 %v2943_v54, 0.0 }
 0x519   : > { %v2953_v40 = vsub.f32 %v2945_v10, %v2951_v37 }
 0x51b   : > { %v2955_v62 = vmax.f32 %v2953_v40, 0.0 }
 0x51d   : > { %2957 = vst [vmem:[%s278_s11] sm:$0xff] %v2955_v62  ;;  %v2830_v4 = vpop.f32.mrf.mxu0 }
 0x51e   : > { %v2724_v15 = vpop.f32.mrf.mxu2 }
 0x51f   : > { %v2725_v43 = vadd.f32 %v2724_v15, %v2438_v1 }
 0x521   : > { %v2790_v27 = vpop.f32.mrf.mxu3 }
 0x522   : > { %v2791_v61 = vadd.f32 %v2790_v27, %v2725_v43 }
 0x524   : > { %v2831_v21 = vadd.f32 %v2830_v4, %v2791_v61 }
 0x525   : > { %v2862_v34 = vpop.f32.mrf.mxu1 }
 0x526   : > { %v2863_v23 = vadd.f32 %v2862_v34, %v2831_v21  ;;  %v2910_v38 = vpop.f32.mrf.mxu2 }
 0x528   : > { %v2911_v58 = vadd.f32 %v2910_v38, %v2863_v23 }
 0x529   : > { %v2940_v19 = vpop.f32.mrf.mxu3 }
 0x52a   : > { %v2941_v30 = vadd.f32 %v2940_v19, %v2911_v58 }
 0x52c   : > { %v2944_v56 = vadd.f32 %v2941_v30, %v4035_v59 }
 0x52e   : > { %v2946_v7 = vmax.f32 %v2944_v56, 0.0 }
 0x530   : > { %v2954_v50 = vsub.f32 %v2946_v7, %v2951_v37 }
 0x532   : > { %v2956_v3 = vmax.f32 %v2954_v50, 0.0 }
 0x534   : > { %2958 = vst [vmem:[%s278_s11 + $0x8] sm:$0xff] %v2956_v3 }
 0x535 PF: > { %s17_s24 = sadd.s32 1, %s3087_s24  }
 0x536   : > { %p14_p4 = scmp.ge.s32.totalorder %s17_s24, 4  }
 0x538   :  { %16 = sbr.rel (!%p14_p4) target bundleno = 1 (0x1), region = 89 }

</bundles_post_ra>
